<compile_context>
chip_gen: v7x
topology: tpu7x:2x2x1
jax: 0.10.0
libtpu: 0.0.40
codegen_flags: <defaults>
</compile_context>

<pallas_src>
import functools

import jax
import jax.numpy as jnp
from jax import lax
from jax.experimental import pallas as pl
from jax.experimental.pallas import tpu as pltpu

NEG_SLOPE = 0.2  # GATv2Conv default negative_slope


def _actor_kernel(n_stocks, hidden, heads, gru_hidden,
                  x_ref, adj_ref, wlr_ref, att_ref,
                  wih_ref, whh_ref, wfc_ref, small_ref,
                  mean_ref):
    N, H, Hg = n_stocks, hidden, gru_hidden
    Hh = heads * H

    x = x_ref[...]                                        # [N, F]
    adj = adj_ref[...]                                    # [N, N], adj[i, j]=1 iff edge j->i

    # Packed small parameters (one DMA instead of five); static slices are free.
    small = small_ref[...]                                # [8, 128]
    blr = small[0:1, :2 * Hh]                             # [1, 2*Hh]  lin_l|lin_r bias
    bih = small[1:2, :3 * Hg]                             # [1, 3*Hg]  b_ih + gat_bias @ w_ih
    bhh = small[2:3, :3 * Hg]                             # [1, 3*Hg]
    bfc = small[3:4, :N]                                  # [1, N]

    # ---------------- GATv2Conv (concat=True) ----------------
    # Fused source/target projection: one MXU call.
    proj = jnp.dot(x, wlr_ref[...], preferred_element_type=jnp.float32) + blr  # [N, 2*Hh]
    xl = proj[:, :Hh]                                     # source projection [N, Hh]
    xr = proj[:, Hh:]                                     # target projection [N, Hh]

    # Fused elementwise work for both heads: one leaky-relu pass over [N, N, Hh].
    s_all = xr[:, None, :] + xl[None, :, :]               # [N, N, Hh]
    s_all = jnp.where(s_all > 0, s_all, NEG_SLOPE * s_all)

    att = att_ref[...]                                    # [heads, H]
    adj_mask = adj > 0.0

    head_outs = []
    for h in range(heads):
        s_h = s_all[:, :, h * H:(h + 1) * H]              # static lane slice [N, N, H]
        # e[i, j] = att_h . leaky_relu(xr_h[i] + xl_h[j])
        e = jnp.sum(s_h * att[h:h + 1, :], axis=-1)       # [N, N]
        # Single mask: masked logits are -1e30 so exp underflows to exactly 0; self-loops
        # guarantee every row has a finite max (no 0/0).
        e = jnp.where(adj_mask, e, -1e30)
        p = jnp.exp(e - jnp.max(e, axis=-1, keepdims=True))
        inv = pl.reciprocal(jnp.sum(p, axis=-1, keepdims=True), approx=True)
        alpha = p * inv                                   # softmax over incoming edges
        head_outs.append(jnp.dot(alpha, xl[:, h * H:(h + 1) * H],
                                 preferred_element_type=jnp.float32))  # [N, H]

    gat = jnp.concatenate(head_outs, axis=-1)             # [N, Hh] (bias folded into bih)

    # ---------------- GRU over node sequence (batch=1, seq=N, h0=0) ----------------
    # Hoisted input projection: one dense matmul covers every timestep.
    gi = jnp.dot(gat, wih_ref[...], preferred_element_type=jnp.float32) + bih  # [N, 3*Hg]
    whh = whh_ref[...]

    h_t = jnp.zeros((1, Hg), jnp.float32)
    for t in range(N):                                    # fully-unrolled serial recurrence
        gi_t = gi[t:t + 1, :]                             # [1, 3*Hg]  (static slice)
        gh = jnp.dot(h_t, whh, preferred_element_type=jnp.float32) + bhh  # [1, 3*Hg]
        # r and z gates in a single EUP sigmoid push.
        rz = jax.nn.sigmoid(gi_t[:, :2 * Hg] + gh[:, :2 * Hg])            # [1, 2*Hg]
        r = rz[:, :Hg]
        z = rz[:, Hg:]
        n = jnp.tanh(gi_t[:, 2 * Hg:] + r * gh[:, 2 * Hg:])
        h_t = (1.0 - z) * n + z * h_t

    # ---------------- policy head ----------------
    mean_ref[...] = (jnp.dot(h_t, wfc_ref[...], preferred_element_type=jnp.float32) + bfc)


def build_adjacency(edge_index, n_stocks):
    """Dense mask adj[i, j] = 1 iff edge j->i, plus self loops (PyG add_self_loops=True).

    Built with one-hot + matmul (no scatter) and meant to be computed ONCE for a static graph,
    outside the per-step forward path.
    """
    src, dst = edge_index[0], edge_index[1]
    src_oh = jax.nn.one_hot(src, n_stocks, dtype=jnp.float32)   # [E, N]
    dst_oh = jax.nn.one_hot(dst, n_stocks, dtype=jnp.float32)   # [E, N]
    adj = jnp.minimum(dst_oh.T @ src_oh, 1.0)                   # [N, N]
    adj = jnp.maximum(adj, jnp.eye(n_stocks, dtype=jnp.float32))
    return adj


def prepare_params(params):
    """One-time host-side parameter folding/packing (hoisted out of the per-step path).

    - fuse lin_l / lin_r weights so both projections come from one MXU call;
    - fold the GATv2 output bias into the GRU input bias:
        (gat + gat_bias) @ w_ih + b_ih == gat @ w_ih + (b_ih + gat_bias @ w_ih);
    - pack the small bias vectors into one (8, 128) buffer (one DMA instead of five).
    """
    wl, wr = params["wl"], params["wr"]
    Hh = wl.shape[1]
    three_hg = params["b_ih"].shape[1]
    n_stocks = params["b_fc"].shape[1]

    wlr = jnp.concatenate([wl, wr], axis=1)                        # [F, 2*Hh]
    blr = jnp.concatenate([params["bl"], params["br"]], axis=1)    # [1, 2*Hh]
    bih_folded = params["b_ih"] + params["gat_bias"] @ params["w_ih"]

    ncols = 128
    assert 2 * Hh <= ncols and three_hg <= ncols and n_stocks <= ncols, \
        "packed small-parameter buffer assumes each vector fits in 128 lanes"
    small = jnp.zeros((8, ncols), jnp.float32)
    small = small.at[0, :2 * Hh].set(blr[0])
    small = small.at[1, :three_hg].set(bih_folded[0])
    small = small.at[2, :three_hg].set(params["b_hh"][0])
    small = small.at[3, :n_stocks].set(params["b_fc"][0])

    return dict(wlr=wlr, att=params["att"], w_ih=params["w_ih"], w_hh=params["w_hh"],
                w_fc=params["w_fc"], small=small, log_std=params["log_std"])


def actor_forward(prepared, x, adj, *, n_stocks, hidden, heads, gru_hidden):
    """Forward pass. x: [N, F] (single graph, as in the PyTorch module) or [B, N, F] batched."""
    single = (x.ndim == 2)
    xb = x[None] if single else x
    B, _, F = xb.shape

    kernel = functools.partial(_actor_kernel, n_stocks, hidden, heads, gru_hidden)

    def const_spec(shape):
        return pl.BlockSpec(shape, lambda b, _s=shape: (0,) * len(_s))

    mean = pl.pallas_call(
        kernel,
        grid=(B,),
        out_shape=jax.ShapeDtypeStruct((B, 1, n_stocks), jnp.float32),
        in_specs=[
            pl.BlockSpec((None, n_stocks, F), lambda b: (b, 0, 0)),      # x: varies per step
            const_spec((n_stocks, n_stocks)),                            # adj (resident)
            const_spec(prepared["wlr"].shape),                           # fused lin_l|lin_r
            const_spec(prepared["att"].shape),                           # attention vectors
            const_spec(prepared["w_ih"].shape),                          # GRU input weights
            const_spec(prepared["w_hh"].shape),                          # GRU hidden weights
            const_spec(prepared["w_fc"].shape),                          # policy head weights
            const_spec(prepared["small"].shape),                         # packed small params
        ],
        out_specs=pl.BlockSpec((None, 1, n_stocks), lambda b: (b, 0, 0)),
        compiler_params=pltpu.CompilerParams(dimension_semantics=("parallel",)),
    )(xb, adj, prepared["wlr"], prepared["att"], prepared["w_ih"],
      prepared["w_hh"], prepared["w_fc"], prepared["small"])

    mean = mean[:, 0, :]                                                 # [B, N]
    # std depends only on parameters -> computed outside the kernel (XLA constant-folds it).
    std = jnp.exp(jnp.clip(prepared["log_std"], -10.0, 2.0))[0]          # [N]
    if single:
        return mean[0], std                                              # matches .squeeze()
    return mean, std


def reference_forward(params, x, edge_index, *, n_stocks, hidden, heads, gru_hidden):
    """Pure-JAX reference with identical math (for correctness check), single graph."""
    N, H, Hg = n_stocks, hidden, gru_hidden
    adj = build_adjacency(edge_index, n_stocks)
    xl = x @ params["wl"] + params["bl"]
    xr = x @ params["wr"] + params["br"]
    outs = []
    for h in range(heads):
        xl_h = xl[:, h * H:(h + 1) * H]
        xr_h = xr[:, h * H:(h + 1) * H]
        att_h = params["att"][h]
        s = xr_h[:, None, :] + xl_h[None, :, :]
        s = jnp.where(s > 0, s, NEG_SLOPE * s)
        e = jnp.sum(s * att_h, axis=-1)
        e = jnp.where(adj > 0.0, e, -1e30)
        p = jnp.exp(e - jnp.max(e, axis=-1, keepdims=True)) * adj
        alpha = p / jnp.sum(p, axis=-1, keepdims=True)
        outs.append(alpha @ xl_h)
    gat = jnp.concatenate(outs, axis=-1) + params["gat_bias"]

    def gru_step(h_prev, x_t):
        x_t = x_t[None, :]
        gi = x_t @ params["w_ih"] + params["b_ih"]
        gh = h_prev @ params["w_hh"] + params["b_hh"]
        r = jax.nn.sigmoid(gi[:, :Hg] + gh[:, :Hg])
        z = jax.nn.sigmoid(gi[:, Hg:2 * Hg] + gh[:, Hg:2 * Hg])
        n = jnp.tanh(gi[:, 2 * Hg:] + r * gh[:, 2 * Hg:])
        return (1.0 - z) * n + z * h_prev, None

    h_last, _ = lax.scan(gru_step, jnp.zeros((1, Hg), jnp.float32), gat)
    mean = (h_last @ params["w_fc"] + params["b_fc"])[0]
    std = jnp.exp(jnp.clip(params["log_std"], -10.0, 2.0))[0]
    return mean, std


def init_params(key, n_stocks, n_features, hidden, heads, gru_hidden):
    Hh = hidden * heads
    ks = jax.random.split(key, 9)

    def w(k, shape, scale=0.1):
        return (scale * jax.random.normal(k, shape)).astype(jnp.float32)

    return dict(
        wl=w(ks[0], (n_features, Hh)),          # GATv2 lin_l (source) weight, transposed
        bl=jnp.zeros((1, Hh), jnp.float32),
        wr=w(ks[1], (n_features, Hh)),          # GATv2 lin_r (target) weight, transposed
        br=jnp.zeros((1, Hh), jnp.float32),
        att=w(ks[2], (heads, hidden)),          # GATv2 attention vector per head
        gat_bias=jnp.zeros((1, Hh), jnp.float32),
        w_ih=w(ks[3], (Hh, 3 * gru_hidden)),    # GRU weight_ih_l0^T (r|z|n)
        b_ih=w(ks[4], (1, 3 * gru_hidden)),
        w_hh=w(ks[5], (gru_hidden, 3 * gru_hidden)),  # GRU weight_hh_l0^T
        b_hh=w(ks[6], (1, 3 * gru_hidden)),
        w_fc=w(ks[7], (gru_hidden, n_stocks)),  # policy_fc weight^T
        b_fc=w(ks[8], (1, n_stocks)),
        log_std=jnp.zeros((1, n_stocks), jnp.float32),  # nn.Parameter(T.zeros(n_stocks))
    )


if __name__ == "__main__":
    N_STOCKS, N_FEATURES, HIDDEN, HEADS, GRU_HIDDEN = 8, 8, 16, 2, 32
    BATCH = 4

    key = jax.random.PRNGKey(0)
    kx, kp = jax.random.split(key)
    x_batch = jax.random.normal(kx, (BATCH, N_STOCKS, N_FEATURES), jnp.float32)

    # deterministic bidirectional ring graph: edge_index shape [2, 2*N]
    idx = jnp.arange(N_STOCKS)
    src = jnp.concatenate([idx, (idx + 1) % N_STOCKS])
    dst = jnp.concatenate([(idx + 1) % N_STOCKS, idx])
    edge_index = jnp.stack([src, dst]).astype(jnp.int32)

    params = init_params(kp, N_STOCKS, N_FEATURES, HIDDEN, HEADS, GRU_HIDDEN)

    # One-time prep, hoisted out of the per-step path (static graph, fixed params).
    prepared = prepare_params(params)
    adj = build_adjacency(edge_index, N_STOCKS)

    fwd = jax.jit(functools.partial(actor_forward, n_stocks=N_STOCKS, hidden=HIDDEN,
                                    heads=HEADS, gru_hidden=GRU_HIDDEN))
    mean_b, std = jax.block_until_ready(fwd(prepared, x_batch, adj))
    assert mean_b.shape == (BATCH, N_STOCKS) and std.shape == (N_STOCKS,)

    # Correctness vs pure-JAX reference (tolerance covers the approx EUP reciprocal, ~1e-4 rel).
    for b in range(BATCH):
        m_ref, s_ref = reference_forward(params, x_batch[b], edge_index,
                                         n_stocks=N_STOCKS, hidden=HIDDEN,
                                         heads=HEADS, gru_hidden=GRU_HIDDEN)
        assert jnp.allclose(mean_b[b], m_ref, rtol=2e-3, atol=2e-3)
        assert jnp.allclose(std, s_ref, rtol=1e-5, atol=1e-5)

    # Single-graph path (matches the PyTorch module's forward(x, edge_index) -> [N], [N]).
    m0, s0 = actor_forward(prepared, x_batch[0], adj, n_stocks=N_STOCKS, hidden=HIDDEN,
                           heads=HEADS, gru_hidden=GRU_HIDDEN)
    m0, s0 = jax.block_until_ready((m0, s0))
    assert m0.shape == (N_STOCKS,) and s0.shape == (N_STOCKS,)
    assert jnp.allclose(m0, mean_b[0], rtol=1e-5, atol=1e-5)

    print("KERNEL_OK")
</pallas_src>

<mosaic_0001>
module attributes {stable_mosaic.version = 11 : i64} {
  func.func @_actor_kernel(%arg0: i32, %arg1: memref<1x8x8xf32, #tpu.memory_space<vmem>>, %arg2: memref<8x8xf32, #tpu.memory_space<vmem>>, %arg3: memref<8x64xf32, #tpu.memory_space<vmem>>, %arg4: memref<2x16xf32, #tpu.memory_space<vmem>>, %arg5: memref<32x96xf32, #tpu.memory_space<vmem>>, %arg6: memref<32x96xf32, #tpu.memory_space<vmem>>, %arg7: memref<32x8xf32, #tpu.memory_space<vmem>>, %arg8: memref<8x128xf32, #tpu.memory_space<vmem>>, %arg9: memref<1x1x8xf32, #tpu.memory_space<vmem>>) attributes {dimension_semantics = [#tpu.dimension_semantics<parallel>], iteration_bounds = array<i64: 4>, scalar_prefetch = 0 : i64, scratch_operands = 0 : i64, tpu.core_type = #tpu.core_type<tc>, window_params = [{transform_indices = @transform_0, window_bounds = array<i64: 1, 8, 8>}, {pipeline_mode = #tpu.pipeline_mode<synchronous>, transform_indices = @transform_1, window_bounds = array<i64: 8, 8>}, {pipeline_mode = #tpu.pipeline_mode<synchronous>, transform_indices = @transform_2, window_bounds = array<i64: 8, 64>}, {pipeline_mode = #tpu.pipeline_mode<synchronous>, transform_indices = @transform_3, window_bounds = array<i64: 2, 16>}, {pipeline_mode = #tpu.pipeline_mode<synchronous>, transform_indices = @transform_4, window_bounds = array<i64: 32, 96>}, {pipeline_mode = #tpu.pipeline_mode<synchronous>, transform_indices = @transform_5, window_bounds = array<i64: 32, 96>}, {pipeline_mode = #tpu.pipeline_mode<synchronous>, transform_indices = @transform_6, window_bounds = array<i64: 32, 8>}, {pipeline_mode = #tpu.pipeline_mode<synchronous>, transform_indices = @transform_7, window_bounds = array<i64: 8, 128>}, {transform_indices = @transform_8, window_bounds = array<i64: 1, 1, 8>}]} {
    %c0 = arith.constant 0 : index
    %c0_0 = arith.constant 0 : index
    %c0_1 = arith.constant 0 : index
    %0 = vector.load %arg1[%c0, %c0_0, %c0_1] : memref<1x8x8xf32, #tpu.memory_space<vmem>>, vector<1x8x8xf32>
    %1 = vector.shape_cast %0 : vector<1x8x8xf32> to vector<8x8xf32>
    %c0_2 = arith.constant 0 : index
    %c0_3 = arith.constant 0 : index
    %2 = vector.load %arg2[%c0_2, %c0_3] : memref<8x8xf32, #tpu.memory_space<vmem>>, vector<8x8xf32>
    %c0_4 = arith.constant 0 : index
    %c0_5 = arith.constant 0 : index
    %3 = vector.load %arg8[%c0_4, %c0_5] : memref<8x128xf32, #tpu.memory_space<vmem>>, vector<8x128xf32>
    %4 = vector.extract_strided_slice %3 {offsets = [0, 0], sizes = [1, 64], strides = [1, 1]} : vector<8x128xf32> to vector<1x64xf32>
    %5 = vector.extract_strided_slice %3 {offsets = [1, 0], sizes = [1, 96], strides = [1, 1]} : vector<8x128xf32> to vector<1x96xf32>
    %6 = vector.extract_strided_slice %3 {offsets = [2, 0], sizes = [1, 96], strides = [1, 1]} : vector<8x128xf32> to vector<1x96xf32>
    %7 = vector.extract_strided_slice %3 {offsets = [3, 0], sizes = [1, 8], strides = [1, 1]} : vector<8x128xf32> to vector<1x8xf32>
    %c0_6 = arith.constant 0 : index
    %c0_7 = arith.constant 0 : index
    %8 = vector.load %arg3[%c0_6, %c0_7] : memref<8x64xf32, #tpu.memory_space<vmem>>, vector<8x64xf32>
    %cst = arith.constant dense<0.000000e+00> : vector<8x64xf32>
    %9 = tpu.matmul %1, %8, %cst {dimension_numbers = #tpu.dot_dimension_numbers<[1], [0], [0], [1], [0, 0, 1, 1], [], []>} : vector<8x8xf32>, vector<8x64xf32>, vector<8x64xf32> -> vector<8x64xf32>
    %10 = vector.broadcast %4 : vector<1x64xf32> to vector<8x64xf32>
    %11 = arith.addf %9, %10 : vector<8x64xf32>
    %12 = vector.extract_strided_slice %11 {offsets = [0, 0], sizes = [8, 32], strides = [1, 1]} : vector<8x64xf32> to vector<8x32xf32>
    %13 = vector.extract_strided_slice %11 {offsets = [0, 32], sizes = [8, 32], strides = [1, 1]} : vector<8x64xf32> to vector<8x32xf32>
    %14 = vector.shape_cast %13 : vector<8x32xf32> to vector<8x1x32xf32>
    %15 = vector.shape_cast %12 : vector<8x32xf32> to vector<1x8x32xf32>
    %16 = vector.broadcast %14 : vector<8x1x32xf32> to vector<8x8x32xf32>
    %17 = vector.broadcast %15 : vector<1x8x32xf32> to vector<8x8x32xf32>
    %18 = arith.addf %16, %17 : vector<8x8x32xf32>
    %cst_8 = arith.constant 0.000000e+00 : f32
    %19 = vector.broadcast %cst_8 : f32 to vector<8x8x32xf32>
    %20 = arith.cmpf ogt, %18, %19 : vector<8x8x32xf32>
    %cst_9 = arith.constant 2.000000e-01 : f32
    %21 = vector.broadcast %cst_9 : f32 to vector<8x8x32xf32>
    %22 = arith.mulf %21, %18 : vector<8x8x32xf32>
    %23 = arith.select %20, %18, %22 : vector<8x8x32xi1>, vector<8x8x32xf32>
    %c0_10 = arith.constant 0 : index
    %c0_11 = arith.constant 0 : index
    %24 = vector.load %arg4[%c0_10, %c0_11] : memref<2x16xf32, #tpu.memory_space<vmem>>, vector<2x16xf32>
    %cst_12 = arith.constant 0.000000e+00 : f32
    %25 = vector.broadcast %cst_12 : f32 to vector<8x8xf32>
    %26 = arith.cmpf ogt, %2, %25 : vector<8x8xf32>
    %27 = vector.extract_strided_slice %23 {offsets = [0, 0, 0], sizes = [8, 8, 16], strides = [1, 1, 1]} : vector<8x8x32xf32> to vector<8x8x16xf32>
    %28 = vector.extract_strided_slice %24 {offsets = [0, 0], sizes = [1, 16], strides = [1, 1]} : vector<2x16xf32> to vector<1x16xf32>
    %29 = vector.shape_cast %28 : vector<1x16xf32> to vector<1x1x16xf32>
    %30 = vector.broadcast %29 : vector<1x1x16xf32> to vector<8x8x16xf32>
    %31 = arith.mulf %27, %30 : vector<8x8x16xf32>
    %cst_13 = arith.constant dense<0.000000e+00> : vector<8x8xf32>
    %32 = vector.multi_reduction <add>, %31, %cst_13 [2] : vector<8x8x16xf32> to vector<8x8xf32>
    %cst_14 = arith.constant -1.000000e+30 : f32
    %33 = vector.broadcast %cst_14 : f32 to vector<8x8xf32>
    %34 = arith.select %26, %32, %33 : vector<8x8xi1>, vector<8x8xf32>
    %cst_15 = arith.constant dense<0xFF800000> : vector<8xf32>
    %35 = vector.multi_reduction <maximumf>, %34, %cst_15 [1] : vector<8x8xf32> to vector<8xf32>
    %36 = vector.shape_cast %35 : vector<8xf32> to vector<8x1xf32>
    %37 = vector.broadcast %36 : vector<8x1xf32> to vector<8x8xf32>
    %38 = arith.subf %34, %37 : vector<8x8xf32>
    %39 = math.exp %38 : vector<8x8xf32>
    %cst_16 = arith.constant dense<0.000000e+00> : vector<8xf32>
    %40 = vector.multi_reduction <add>, %39, %cst_16 [1] : vector<8x8xf32> to vector<8xf32>
    %41 = vector.shape_cast %40 : vector<8xf32> to vector<8x1xf32>
    %42 = tpu.reciprocal %41 {approx = true} : vector<8x1xf32> -> vector<8x1xf32>
    %43 = vector.broadcast %42 : vector<8x1xf32> to vector<8x8xf32>
    %44 = arith.mulf %39, %43 : vector<8x8xf32>
    %45 = vector.extract_strided_slice %12 {offsets = [0, 0], sizes = [8, 16], strides = [1, 1]} : vector<8x32xf32> to vector<8x16xf32>
    %cst_17 = arith.constant dense<0.000000e+00> : vector<8x16xf32>
    %46 = tpu.matmul %44, %45, %cst_17 {dimension_numbers = #tpu.dot_dimension_numbers<[1], [0], [0], [1], [0, 0, 1, 1], [], []>} : vector<8x8xf32>, vector<8x16xf32>, vector<8x16xf32> -> vector<8x16xf32>
    %47 = vector.extract_strided_slice %23 {offsets = [0, 0, 16], sizes = [8, 8, 16], strides = [1, 1, 1]} : vector<8x8x32xf32> to vector<8x8x16xf32>
    %48 = vector.extract_strided_slice %24 {offsets = [1, 0], sizes = [1, 16], strides = [1, 1]} : vector<2x16xf32> to vector<1x16xf32>
    %49 = vector.shape_cast %48 : vector<1x16xf32> to vector<1x1x16xf32>
    %50 = vector.broadcast %49 : vector<1x1x16xf32> to vector<8x8x16xf32>
    %51 = arith.mulf %47, %50 : vector<8x8x16xf32>
    %cst_18 = arith.constant dense<0.000000e+00> : vector<8x8xf32>
    %52 = vector.multi_reduction <add>, %51, %cst_18 [2] : vector<8x8x16xf32> to vector<8x8xf32>
    %cst_19 = arith.constant -1.000000e+30 : f32
    %53 = vector.broadcast %cst_19 : f32 to vector<8x8xf32>
    %54 = arith.select %26, %52, %53 : vector<8x8xi1>, vector<8x8xf32>
    %cst_20 = arith.constant dense<0xFF800000> : vector<8xf32>
    %55 = vector.multi_reduction <maximumf>, %54, %cst_20 [1] : vector<8x8xf32> to vector<8xf32>
    %56 = vector.shape_cast %55 : vector<8xf32> to vector<8x1xf32>
    %57 = vector.broadcast %56 : vector<8x1xf32> to vector<8x8xf32>
    %58 = arith.subf %54, %57 : vector<8x8xf32>
    %59 = math.exp %58 : vector<8x8xf32>
    %cst_21 = arith.constant dense<0.000000e+00> : vector<8xf32>
    %60 = vector.multi_reduction <add>, %59, %cst_21 [1] : vector<8x8xf32> to vector<8xf32>
    %61 = vector.shape_cast %60 : vector<8xf32> to vector<8x1xf32>
    %62 = tpu.reciprocal %61 {approx = true} : vector<8x1xf32> -> vector<8x1xf32>
    %63 = vector.broadcast %62 : vector<8x1xf32> to vector<8x8xf32>
    %64 = arith.mulf %59, %63 : vector<8x8xf32>
    %65 = vector.extract_strided_slice %12 {offsets = [0, 16], sizes = [8, 16], strides = [1, 1]} : vector<8x32xf32> to vector<8x16xf32>
    %cst_22 = arith.constant dense<0.000000e+00> : vector<8x16xf32>
    %66 = tpu.matmul %64, %65, %cst_22 {dimension_numbers = #tpu.dot_dimension_numbers<[1], [0], [0], [1], [0, 0, 1, 1], [], []>} : vector<8x8xf32>, vector<8x16xf32>, vector<8x16xf32> -> vector<8x16xf32>
    %67 = tpu.concatenate %46, %66 in 1 : vector<8x16xf32>, vector<8x16xf32> -> vector<8x32xf32>
    %c0_23 = arith.constant 0 : index
    %c0_24 = arith.constant 0 : index
    %68 = vector.load %arg5[%c0_23, %c0_24] : memref<32x96xf32, #tpu.memory_space<vmem>>, vector<32x96xf32>
    %cst_25 = arith.constant dense<0.000000e+00> : vector<8x96xf32>
    %69 = tpu.matmul %67, %68, %cst_25 {dimension_numbers = #tpu.dot_dimension_numbers<[1], [0], [0], [1], [0, 0, 1, 1], [], []>} : vector<8x32xf32>, vector<32x96xf32>, vector<8x96xf32> -> vector<8x96xf32>
    %70 = vector.broadcast %5 : vector<1x96xf32> to vector<8x96xf32>
    %71 = arith.addf %69, %70 : vector<8x96xf32>
    %c0_26 = arith.constant 0 : index
    %c0_27 = arith.constant 0 : index
    %72 = vector.load %arg6[%c0_26, %c0_27] : memref<32x96xf32, #tpu.memory_space<vmem>>, vector<32x96xf32>
    %cst_28 = arith.constant 0.000000e+00 : f32
    %73 = vector.broadcast %cst_28 : f32 to vector<1x32xf32>
    %74 = vector.extract_strided_slice %71 {offsets = [0, 0], sizes = [1, 96], strides = [1, 1]} : vector<8x96xf32> to vector<1x96xf32>
    %cst_29 = arith.constant dense<0.000000e+00> : vector<1x96xf32>
    %75 = tpu.matmul %73, %72, %cst_29 {dimension_numbers = #tpu.dot_dimension_numbers<[1], [0], [0], [1], [0, 0, 1, 1], [], []>} : vector<1x32xf32>, vector<32x96xf32>, vector<1x96xf32> -> vector<1x96xf32>
    %76 = arith.addf %75, %6 : vector<1x96xf32>
    %77 = vector.extract_strided_slice %74 {offsets = [0, 0], sizes = [1, 64], strides = [1, 1]} : vector<1x96xf32> to vector<1x64xf32>
    %78 = vector.extract_strided_slice %76 {offsets = [0, 0], sizes = [1, 64], strides = [1, 1]} : vector<1x96xf32> to vector<1x64xf32>
    %79 = arith.addf %77, %78 : vector<1x64xf32>
    %80 = arith.negf %79 : vector<1x64xf32>
    %81 = math.exp %80 : vector<1x64xf32>
    %cst_30 = arith.constant 1.000000e+00 : f32
    %82 = vector.broadcast %cst_30 : f32 to vector<1x64xf32>
    %83 = arith.addf %82, %81 : vector<1x64xf32>
    %84 = arith.divf %82, %83 : vector<1x64xf32>
    %85 = vector.extract_strided_slice %84 {offsets = [0, 0], sizes = [1, 32], strides = [1, 1]} : vector<1x64xf32> to vector<1x32xf32>
    %86 = vector.extract_strided_slice %84 {offsets = [0, 32], sizes = [1, 32], strides = [1, 1]} : vector<1x64xf32> to vector<1x32xf32>
    %87 = vector.extract_strided_slice %74 {offsets = [0, 64], sizes = [1, 32], strides = [1, 1]} : vector<1x96xf32> to vector<1x32xf32>
    %88 = vector.extract_strided_slice %76 {offsets = [0, 64], sizes = [1, 32], strides = [1, 1]} : vector<1x96xf32> to vector<1x32xf32>
    %89 = arith.mulf %85, %88 : vector<1x32xf32>
    %90 = arith.addf %87, %89 : vector<1x32xf32>
    %91 = math.tanh %90 : vector<1x32xf32>
    %cst_31 = arith.constant 1.000000e+00 : f32
    %92 = vector.broadcast %cst_31 : f32 to vector<1x32xf32>
    %93 = arith.subf %92, %86 : vector<1x32xf32>
    %94 = arith.mulf %93, %91 : vector<1x32xf32>
    %95 = arith.mulf %86, %73 : vector<1x32xf32>
    %96 = arith.addf %94, %95 : vector<1x32xf32>
    %97 = vector.extract_strided_slice %71 {offsets = [1, 0], sizes = [1, 96], strides = [1, 1]} : vector<8x96xf32> to vector<1x96xf32>
    %cst_32 = arith.constant dense<0.000000e+00> : vector<1x96xf32>
    %98 = tpu.matmul %96, %72, %cst_32 {dimension_numbers = #tpu.dot_dimension_numbers<[1], [0], [0], [1], [0, 0, 1, 1], [], []>} : vector<1x32xf32>, vector<32x96xf32>, vector<1x96xf32> -> vector<1x96xf32>
    %99 = arith.addf %98, %6 : vector<1x96xf32>
    %100 = vector.extract_strided_slice %97 {offsets = [0, 0], sizes = [1, 64], strides = [1, 1]} : vector<1x96xf32> to vector<1x64xf32>
    %101 = vector.extract_strided_slice %99 {offsets = [0, 0], sizes = [1, 64], strides = [1, 1]} : vector<1x96xf32> to vector<1x64xf32>
    %102 = arith.addf %100, %101 : vector<1x64xf32>
    %103 = arith.negf %102 : vector<1x64xf32>
    %104 = math.exp %103 : vector<1x64xf32>
    %cst_33 = arith.constant 1.000000e+00 : f32
    %105 = vector.broadcast %cst_33 : f32 to vector<1x64xf32>
    %106 = arith.addf %105, %104 : vector<1x64xf32>
    %107 = arith.divf %105, %106 : vector<1x64xf32>
    %108 = vector.extract_strided_slice %107 {offsets = [0, 0], sizes = [1, 32], strides = [1, 1]} : vector<1x64xf32> to vector<1x32xf32>
    %109 = vector.extract_strided_slice %107 {offsets = [0, 32], sizes = [1, 32], strides = [1, 1]} : vector<1x64xf32> to vector<1x32xf32>
    %110 = vector.extract_strided_slice %97 {offsets = [0, 64], sizes = [1, 32], strides = [1, 1]} : vector<1x96xf32> to vector<1x32xf32>
    %111 = vector.extract_strided_slice %99 {offsets = [0, 64], sizes = [1, 32], strides = [1, 1]} : vector<1x96xf32> to vector<1x32xf32>
    %112 = arith.mulf %108, %111 : vector<1x32xf32>
    %113 = arith.addf %110, %112 : vector<1x32xf32>
    %114 = math.tanh %113 : vector<1x32xf32>
    %cst_34 = arith.constant 1.000000e+00 : f32
    %115 = vector.broadcast %cst_34 : f32 to vector<1x32xf32>
    %116 = arith.subf %115, %109 : vector<1x32xf32>
    %117 = arith.mulf %116, %114 : vector<1x32xf32>
    %118 = arith.mulf %109, %96 : vector<1x32xf32>
    %119 = arith.addf %117, %118 : vector<1x32xf32>
    %120 = vector.extract_strided_slice %71 {offsets = [2, 0], sizes = [1, 96], strides = [1, 1]} : vector<8x96xf32> to vector<1x96xf32>
    %cst_35 = arith.constant dense<0.000000e+00> : vector<1x96xf32>
    %121 = tpu.matmul %119, %72, %cst_35 {dimension_numbers = #tpu.dot_dimension_numbers<[1], [0], [0], [1], [0, 0, 1, 1], [], []>} : vector<1x32xf32>, vector<32x96xf32>, vector<1x96xf32> -> vector<1x96xf32>
    %122 = arith.addf %121, %6 : vector<1x96xf32>
    %123 = vector.extract_strided_slice %120 {offsets = [0, 0], sizes = [1, 64], strides = [1, 1]} : vector<1x96xf32> to vector<1x64xf32>
    %124 = vector.extract_strided_slice %122 {offsets = [0, 0], sizes = [1, 64], strides = [1, 1]} : vector<1x96xf32> to vector<1x64xf32>
    %125 = arith.addf %123, %124 : vector<1x64xf32>
    %126 = arith.negf %125 : vector<1x64xf32>
    %127 = math.exp %126 : vector<1x64xf32>
    %cst_36 = arith.constant 1.000000e+00 : f32
    %128 = vector.broadcast %cst_36 : f32 to vector<1x64xf32>
    %129 = arith.addf %128, %127 : vector<1x64xf32>
    %130 = arith.divf %128, %129 : vector<1x64xf32>
    %131 = vector.extract_strided_slice %130 {offsets = [0, 0], sizes = [1, 32], strides = [1, 1]} : vector<1x64xf32> to vector<1x32xf32>
    %132 = vector.extract_strided_slice %130 {offsets = [0, 32], sizes = [1, 32], strides = [1, 1]} : vector<1x64xf32> to vector<1x32xf32>
    %133 = vector.extract_strided_slice %120 {offsets = [0, 64], sizes = [1, 32], strides = [1, 1]} : vector<1x96xf32> to vector<1x32xf32>
    %134 = vector.extract_strided_slice %122 {offsets = [0, 64], sizes = [1, 32], strides = [1, 1]} : vector<1x96xf32> to vector<1x32xf32>
    %135 = arith.mulf %131, %134 : vector<1x32xf32>
    %136 = arith.addf %133, %135 : vector<1x32xf32>
    %137 = math.tanh %136 : vector<1x32xf32>
    %cst_37 = arith.constant 1.000000e+00 : f32
    %138 = vector.broadcast %cst_37 : f32 to vector<1x32xf32>
    %139 = arith.subf %138, %132 : vector<1x32xf32>
    %140 = arith.mulf %139, %137 : vector<1x32xf32>
    %141 = arith.mulf %132, %119 : vector<1x32xf32>
    %142 = arith.addf %140, %141 : vector<1x32xf32>
    %143 = vector.extract_strided_slice %71 {offsets = [3, 0], sizes = [1, 96], strides = [1, 1]} : vector<8x96xf32> to vector<1x96xf32>
    %cst_38 = arith.constant dense<0.000000e+00> : vector<1x96xf32>
    %144 = tpu.matmul %142, %72, %cst_38 {dimension_numbers = #tpu.dot_dimension_numbers<[1], [0], [0], [1], [0, 0, 1, 1], [], []>} : vector<1x32xf32>, vector<32x96xf32>, vector<1x96xf32> -> vector<1x96xf32>
    %145 = arith.addf %144, %6 : vector<1x96xf32>
    %146 = vector.extract_strided_slice %143 {offsets = [0, 0], sizes = [1, 64], strides = [1, 1]} : vector<1x96xf32> to vector<1x64xf32>
    %147 = vector.extract_strided_slice %145 {offsets = [0, 0], sizes = [1, 64], strides = [1, 1]} : vector<1x96xf32> to vector<1x64xf32>
    %148 = arith.addf %146, %147 : vector<1x64xf32>
    %149 = arith.negf %148 : vector<1x64xf32>
    %150 = math.exp %149 : vector<1x64xf32>
    %cst_39 = arith.constant 1.000000e+00 : f32
    %151 = vector.broadcast %cst_39 : f32 to vector<1x64xf32>
    %152 = arith.addf %151, %150 : vector<1x64xf32>
    %153 = arith.divf %151, %152 : vector<1x64xf32>
    %154 = vector.extract_strided_slice %153 {offsets = [0, 0], sizes = [1, 32], strides = [1, 1]} : vector<1x64xf32> to vector<1x32xf32>
    %155 = vector.extract_strided_slice %153 {offsets = [0, 32], sizes = [1, 32], strides = [1, 1]} : vector<1x64xf32> to vector<1x32xf32>
    %156 = vector.extract_strided_slice %143 {offsets = [0, 64], sizes = [1, 32], strides = [1, 1]} : vector<1x96xf32> to vector<1x32xf32>
    %157 = vector.extract_strided_slice %145 {offsets = [0, 64], sizes = [1, 32], strides = [1, 1]} : vector<1x96xf32> to vector<1x32xf32>
    %158 = arith.mulf %154, %157 : vector<1x32xf32>
    %159 = arith.addf %156, %158 : vector<1x32xf32>
    %160 = math.tanh %159 : vector<1x32xf32>
    %cst_40 = arith.constant 1.000000e+00 : f32
    %161 = vector.broadcast %cst_40 : f32 to vector<1x32xf32>
    %162 = arith.subf %161, %155 : vector<1x32xf32>
    %163 = arith.mulf %162, %160 : vector<1x32xf32>
    %164 = arith.mulf %155, %142 : vector<1x32xf32>
    %165 = arith.addf %163, %164 : vector<1x32xf32>
    %166 = vector.extract_strided_slice %71 {offsets = [4, 0], sizes = [1, 96], strides = [1, 1]} : vector<8x96xf32> to vector<1x96xf32>
    %cst_41 = arith.constant dense<0.000000e+00> : vector<1x96xf32>
    %167 = tpu.matmul %165, %72, %cst_41 {dimension_numbers = #tpu.dot_dimension_numbers<[1], [0], [0], [1], [0, 0, 1, 1], [], []>} : vector<1x32xf32>, vector<32x96xf32>, vector<1x96xf32> -> vector<1x96xf32>
    %168 = arith.addf %167, %6 : vector<1x96xf32>
    %169 = vector.extract_strided_slice %166 {offsets = [0, 0], sizes = [1, 64], strides = [1, 1]} : vector<1x96xf32> to vector<1x64xf32>
    %170 = vector.extract_strided_slice %168 {offsets = [0, 0], sizes = [1, 64], strides = [1, 1]} : vector<1x96xf32> to vector<1x64xf32>
    %171 = arith.addf %169, %170 : vector<1x64xf32>
    %172 = arith.negf %171 : vector<1x64xf32>
    %173 = math.exp %172 : vector<1x64xf32>
    %cst_42 = arith.constant 1.000000e+00 : f32
    %174 = vector.broadcast %cst_42 : f32 to vector<1x64xf32>
    %175 = arith.addf %174, %173 : vector<1x64xf32>
    %176 = arith.divf %174, %175 : vector<1x64xf32>
    %177 = vector.extract_strided_slice %176 {offsets = [0, 0], sizes = [1, 32], strides = [1, 1]} : vector<1x64xf32> to vector<1x32xf32>
    %178 = vector.extract_strided_slice %176 {offsets = [0, 32], sizes = [1, 32], strides = [1, 1]} : vector<1x64xf32> to vector<1x32xf32>
    %179 = vector.extract_strided_slice %166 {offsets = [0, 64], sizes = [1, 32], strides = [1, 1]} : vector<1x96xf32> to vector<1x32xf32>
    %180 = vector.extract_strided_slice %168 {offsets = [0, 64], sizes = [1, 32], strides = [1, 1]} : vector<1x96xf32> to vector<1x32xf32>
    %181 = arith.mulf %177, %180 : vector<1x32xf32>
    %182 = arith.addf %179, %181 : vector<1x32xf32>
    %183 = math.tanh %182 : vector<1x32xf32>
    %cst_43 = arith.constant 1.000000e+00 : f32
    %184 = vector.broadcast %cst_43 : f32 to vector<1x32xf32>
    %185 = arith.subf %184, %178 : vector<1x32xf32>
    %186 = arith.mulf %185, %183 : vector<1x32xf32>
    %187 = arith.mulf %178, %165 : vector<1x32xf32>
    %188 = arith.addf %186, %187 : vector<1x32xf32>
    %189 = vector.extract_strided_slice %71 {offsets = [5, 0], sizes = [1, 96], strides = [1, 1]} : vector<8x96xf32> to vector<1x96xf32>
    %cst_44 = arith.constant dense<0.000000e+00> : vector<1x96xf32>
    %190 = tpu.matmul %188, %72, %cst_44 {dimension_numbers = #tpu.dot_dimension_numbers<[1], [0], [0], [1], [0, 0, 1, 1], [], []>} : vector<1x32xf32>, vector<32x96xf32>, vector<1x96xf32> -> vector<1x96xf32>
    %191 = arith.addf %190, %6 : vector<1x96xf32>
    %192 = vector.extract_strided_slice %189 {offsets = [0, 0], sizes = [1, 64], strides = [1, 1]} : vector<1x96xf32> to vector<1x64xf32>
    %193 = vector.extract_strided_slice %191 {offsets = [0, 0], sizes = [1, 64], strides = [1, 1]} : vector<1x96xf32> to vector<1x64xf32>
    %194 = arith.addf %192, %193 : vector<1x64xf32>
    %195 = arith.negf %194 : vector<1x64xf32>
    %196 = math.exp %195 : vector<1x64xf32>
    %cst_45 = arith.constant 1.000000e+00 : f32
    %197 = vector.broadcast %cst_45 : f32 to vector<1x64xf32>
    %198 = arith.addf %197, %196 : vector<1x64xf32>
    %199 = arith.divf %197, %198 : vector<1x64xf32>
    %200 = vector.extract_strided_slice %199 {offsets = [0, 0], sizes = [1, 32], strides = [1, 1]} : vector<1x64xf32> to vector<1x32xf32>
    %201 = vector.extract_strided_slice %199 {offsets = [0, 32], sizes = [1, 32], strides = [1, 1]} : vector<1x64xf32> to vector<1x32xf32>
    %202 = vector.extract_strided_slice %189 {offsets = [0, 64], sizes = [1, 32], strides = [1, 1]} : vector<1x96xf32> to vector<1x32xf32>
    %203 = vector.extract_strided_slice %191 {offsets = [0, 64], sizes = [1, 32], strides = [1, 1]} : vector<1x96xf32> to vector<1x32xf32>
    %204 = arith.mulf %200, %203 : vector<1x32xf32>
    %205 = arith.addf %202, %204 : vector<1x32xf32>
    %206 = math.tanh %205 : vector<1x32xf32>
    %cst_46 = arith.constant 1.000000e+00 : f32
    %207 = vector.broadcast %cst_46 : f32 to vector<1x32xf32>
    %208 = arith.subf %207, %201 : vector<1x32xf32>
    %209 = arith.mulf %208, %206 : vector<1x32xf32>
    %210 = arith.mulf %201, %188 : vector<1x32xf32>
    %211 = arith.addf %209, %210 : vector<1x32xf32>
    %212 = vector.extract_strided_slice %71 {offsets = [6, 0], sizes = [1, 96], strides = [1, 1]} : vector<8x96xf32> to vector<1x96xf32>
    %cst_47 = arith.constant dense<0.000000e+00> : vector<1x96xf32>
    %213 = tpu.matmul %211, %72, %cst_47 {dimension_numbers = #tpu.dot_dimension_numbers<[1], [0], [0], [1], [0, 0, 1, 1], [], []>} : vector<1x32xf32>, vector<32x96xf32>, vector<1x96xf32> -> vector<1x96xf32>
    %214 = arith.addf %213, %6 : vector<1x96xf32>
    %215 = vector.extract_strided_slice %212 {offsets = [0, 0], sizes = [1, 64], strides = [1, 1]} : vector<1x96xf32> to vector<1x64xf32>
    %216 = vector.extract_strided_slice %214 {offsets = [0, 0], sizes = [1, 64], strides = [1, 1]} : vector<1x96xf32> to vector<1x64xf32>
    %217 = arith.addf %215, %216 : vector<1x64xf32>
    %218 = arith.negf %217 : vector<1x64xf32>
    %219 = math.exp %218 : vector<1x64xf32>
    %cst_48 = arith.constant 1.000000e+00 : f32
    %220 = vector.broadcast %cst_48 : f32 to vector<1x64xf32>
    %221 = arith.addf %220, %219 : vector<1x64xf32>
    %222 = arith.divf %220, %221 : vector<1x64xf32>
    %223 = vector.extract_strided_slice %222 {offsets = [0, 0], sizes = [1, 32], strides = [1, 1]} : vector<1x64xf32> to vector<1x32xf32>
    %224 = vector.extract_strided_slice %222 {offsets = [0, 32], sizes = [1, 32], strides = [1, 1]} : vector<1x64xf32> to vector<1x32xf32>
    %225 = vector.extract_strided_slice %212 {offsets = [0, 64], sizes = [1, 32], strides = [1, 1]} : vector<1x96xf32> to vector<1x32xf32>
    %226 = vector.extract_strided_slice %214 {offsets = [0, 64], sizes = [1, 32], strides = [1, 1]} : vector<1x96xf32> to vector<1x32xf32>
    %227 = arith.mulf %223, %226 : vector<1x32xf32>
    %228 = arith.addf %225, %227 : vector<1x32xf32>
    %229 = math.tanh %228 : vector<1x32xf32>
    %cst_49 = arith.constant 1.000000e+00 : f32
    %230 = vector.broadcast %cst_49 : f32 to vector<1x32xf32>
    %231 = arith.subf %230, %224 : vector<1x32xf32>
    %232 = arith.mulf %231, %229 : vector<1x32xf32>
    %233 = arith.mulf %224, %211 : vector<1x32xf32>
    %234 = arith.addf %232, %233 : vector<1x32xf32>
    %235 = vector.extract_strided_slice %71 {offsets = [7, 0], sizes = [1, 96], strides = [1, 1]} : vector<8x96xf32> to vector<1x96xf32>
    %cst_50 = arith.constant dense<0.000000e+00> : vector<1x96xf32>
    %236 = tpu.matmul %234, %72, %cst_50 {dimension_numbers = #tpu.dot_dimension_numbers<[1], [0], [0], [1], [0, 0, 1, 1], [], []>} : vector<1x32xf32>, vector<32x96xf32>, vector<1x96xf32> -> vector<1x96xf32>
    %237 = arith.addf %236, %6 : vector<1x96xf32>
    %238 = vector.extract_strided_slice %235 {offsets = [0, 0], sizes = [1, 64], strides = [1, 1]} : vector<1x96xf32> to vector<1x64xf32>
    %239 = vector.extract_strided_slice %237 {offsets = [0, 0], sizes = [1, 64], strides = [1, 1]} : vector<1x96xf32> to vector<1x64xf32>
    %240 = arith.addf %238, %239 : vector<1x64xf32>
    %241 = arith.negf %240 : vector<1x64xf32>
    %242 = math.exp %241 : vector<1x64xf32>
    %cst_51 = arith.constant 1.000000e+00 : f32
    %243 = vector.broadcast %cst_51 : f32 to vector<1x64xf32>
    %244 = arith.addf %243, %242 : vector<1x64xf32>
    %245 = arith.divf %243, %244 : vector<1x64xf32>
    %246 = vector.extract_strided_slice %245 {offsets = [0, 0], sizes = [1, 32], strides = [1, 1]} : vector<1x64xf32> to vector<1x32xf32>
    %247 = vector.extract_strided_slice %245 {offsets = [0, 32], sizes = [1, 32], strides = [1, 1]} : vector<1x64xf32> to vector<1x32xf32>
    %248 = vector.extract_strided_slice %235 {offsets = [0, 64], sizes = [1, 32], strides = [1, 1]} : vector<1x96xf32> to vector<1x32xf32>
    %249 = vector.extract_strided_slice %237 {offsets = [0, 64], sizes = [1, 32], strides = [1, 1]} : vector<1x96xf32> to vector<1x32xf32>
    %250 = arith.mulf %246, %249 : vector<1x32xf32>
    %251 = arith.addf %248, %250 : vector<1x32xf32>
    %252 = math.tanh %251 : vector<1x32xf32>
    %cst_52 = arith.constant 1.000000e+00 : f32
    %253 = vector.broadcast %cst_52 : f32 to vector<1x32xf32>
    %254 = arith.subf %253, %247 : vector<1x32xf32>
    %255 = arith.mulf %254, %252 : vector<1x32xf32>
    %256 = arith.mulf %247, %234 : vector<1x32xf32>
    %257 = arith.addf %255, %256 : vector<1x32xf32>
    %c0_53 = arith.constant 0 : index
    %c0_54 = arith.constant 0 : index
    %258 = vector.load %arg7[%c0_53, %c0_54] : memref<32x8xf32, #tpu.memory_space<vmem>>, vector<32x8xf32>
    %cst_55 = arith.constant dense<0.000000e+00> : vector<1x8xf32>
    %259 = tpu.matmul %257, %258, %cst_55 {dimension_numbers = #tpu.dot_dimension_numbers<[1], [0], [0], [1], [0, 0, 1, 1], [], []>} : vector<1x32xf32>, vector<32x8xf32>, vector<1x8xf32> -> vector<1x8xf32>
    %260 = arith.addf %259, %7 : vector<1x8xf32>
    %c0_56 = arith.constant 0 : index
    %c0_57 = arith.constant 0 : index
    %c0_58 = arith.constant 0 : index
    %261 = vector.load %arg9[%c0_56, %c0_57, %c0_58] : memref<1x1x8xf32, #tpu.memory_space<vmem>>, vector<1x1x8xf32>
    %262 = vector.shape_cast %261 : vector<1x1x8xf32> to vector<1x8xf32>
    %263 = vector.shape_cast %260 : vector<1x8xf32> to vector<1x1x8xf32>
    tpu.vector_store %arg9[%c0_56, %c0_57, %c0_58], %263 {strides = array<i32>} : memref<1x1x8xf32, #tpu.memory_space<vmem>>, vector<1x1x8xf32>,
    return
  }
  func.func @transform_0(%arg0: i32) -> (i32, i32, i32) {
    %c0_i32 = arith.constant 0 : i32
    %c0_i32_0 = arith.constant 0 : i32
    %c0_i32_1 = arith.constant 0 : i32
    return %arg0, %c0_i32, %c0_i32_0 : i32, i32, i32
  }
  func.func @transform_1(%arg0: i32) -> (i32, i32) {
    %c0_i32 = arith.constant 0 : i32
    %c0_i32_0 = arith.constant 0 : i32
    %c0_i32_1 = arith.constant 0 : i32
    return %c0_i32, %c0_i32_0 : i32, i32
  }
  func.func @transform_2(%arg0: i32) -> (i32, i32) {
    %c0_i32 = arith.constant 0 : i32
    %c0_i32_0 = arith.constant 0 : i32
    %c0_i32_1 = arith.constant 0 : i32
    return %c0_i32, %c0_i32_0 : i32, i32
  }
  func.func @transform_3(%arg0: i32) -> (i32, i32) {
    %c0_i32 = arith.constant 0 : i32
    %c0_i32_0 = arith.constant 0 : i32
    %c0_i32_1 = arith.constant 0 : i32
    return %c0_i32, %c0_i32_0 : i32, i32
  }
  func.func @transform_4(%arg0: i32) -> (i32, i32) {
    %c0_i32 = arith.constant 0 : i32
    %c0_i32_0 = arith.constant 0 : i32
    %c0_i32_1 = arith.constant 0 : i32
    return %c0_i32, %c0_i32_0 : i32, i32
  }
  func.func @transform_5(%arg0: i32) -> (i32, i32) {
    %c0_i32 = arith.constant 0 : i32
    %c0_i32_0 = arith.constant 0 : i32
    %c0_i32_1 = arith.constant 0 : i32
    return %c0_i32, %c0_i32_0 : i32, i32
  }
  func.func @transform_6(%arg0: i32) -> (i32, i32) {
    %c0_i32 = arith.constant 0 : i32
    %c0_i32_0 = arith.constant 0 : i32
    %c0_i32_1 = arith.constant 0 : i32
    return %c0_i32, %c0_i32_0 : i32, i32
  }
  func.func @transform_7(%arg0: i32) -> (i32, i32) {
    %c0_i32 = arith.constant 0 : i32
    %c0_i32_0 = arith.constant 0 : i32
    %c0_i32_1 = arith.constant 0 : i32
    return %c0_i32, %c0_i32_0 : i32, i32
  }
  func.func @transform_8(%arg0: i32) -> (i32, i32, i32) {
    %c0_i32 = arith.constant 0 : i32
    %c0_i32_0 = arith.constant 0 : i32
    %c0_i32_1 = arith.constant 0 : i32
    return %arg0, %c0_i32, %c0_i32_0 : i32, i32, i32
  }
}

</mosaic_0001>

<bundles_post_ra>
// kernel: actor_forward.1
= control target key start
LH: loop header
LB: loop body
LE: loop exit
PB: predicated region body
PF: predicated region fallthrough
CT: control target
= control target key end

     0   :  { %13 = vsyncpa [#allocation3], 0  ;;  %s3166_s0 = inlined_call_operand.vmem [shape: f32[4,8,8], index: 0, kind: input, shape index: {}]   ;;  %s3167_s1 = inlined_call_operand.vmem [shape: f32[8,8], index: 1, kind: input, shape index: {}]   ;;  %s3168_s2 = inlined_call_operand.hbm [shape: f32[8,64], index: 2, kind: input, shape index: {}]   ;;  %s3169_s3 = inlined_call_operand.vmem [shape: f32[2,16], index: 3, kind: input, shape index: {}]   ;;  %s3170_s4 = inlined_call_operand.hbm [shape: f32[32,96], index: 4, kind: input, shape index: {}]   ;;  %s3171_s5 = inlined_call_operand.hbm [shape: f32[32,96], index: 5, kind: input, shape index: {}]   ;;  %s3172_s6 = inlined_call_operand.vmem [shape: f32[32,8], index: 6, kind: input, shape index: {}]   ;;  %s3173_s7 = inlined_call_operand.vmem [shape: f32[8,128], index: 7, kind: input, shape index: {}]   ;;  %s3174_s8 = inlined_call_operand.hbm [shape: f32[4,1,8], index: 8, kind: output, shape index: {}]  }
   0x1   :  { %14 = vsyncpa [#allocation6], 0 }
   0x2   :  { %15 = vsyncpa [#allocation4], 0 }
   0x3   :  { %17 = vsyncpa [#allocation4 + $0x1], 0  ;;  %s2724_s27 = smov 0   ;;  %s2726_s28 = smov 0  }
   0x4   :  { %s2728_s29 = smov 0   ;;  %s2730_s30 = smov 0  }
   0x5 LB: > { %3182 = sst [smem:[#allocation12_spill]] %s2656_s29  ;;  %s2745_s9 = sadd.s32 4294967295, %s2660_s30   ;;  %s2660_s30 = sphi %s2730_s30, %s3199_s30   ;;  %s2656_s29 = sphi %s2728_s29, %s3204_s29   ;;  %s2652_s28 = sphi %s2726_s28, %s3203_s28   ;;  %s2648_s27 = sphi %s2724_s27, %s3202_s27  }
   0x6   : > { %s2091_s10 = sadd.s32 4294967294, %s2660_s30   ;;  %s2749_s11 = sadd.s32 1, %s2660_s30  }
   0x7   : > { %3183 = sst [smem:[#allocation13_spill]] %s2749_s11  ;;  %s203_s12 = sadd.s32 1, %s2656_s29 }
   0x8   : > { %s200_s13 = ssub.s32 %s2660_s30, %s2749_s11  ;;  %p213_p0 = scmp.ne.s32.totalorder %s2656_s29, %s2652_s28 }
   0x9   : > { %p201_p1 = scmp.eq.s32.totalorder %s200_s13, 0  ;;  %p214_p2 = scmp.eq.s32.totalorder %s2745_s9, 3 }
   0xa   : > { %p219_p3 = scmp.ne.s32.totalorder %s2652_s28, %s2648_s27  ;;  %p220_p4 = scmp.eq.s32.totalorder %s2091_s10, 3 }
   0xb   : > { %s2760_s14 = scalar_select %p201_p1, %s2656_s29, %s203_s12  }
   0xc   : > { %p2762_p5 = por %p214_p2, %p213_p0  ;;  %p2766_p6 = por %p220_p4, %p219_p3 }
   0xd   : > { %3184 = sst [smem:[#allocation14_spill]] %s2760_s14  ;;  %p2092_p7 = scmp.ge.s32.totalorder %s2660_s30, 1 }
   0xe   : > { %s3185_s15 = scalar_select %p2762_p5, 1, 0 }
   0xf   : > { %s3186_s16 = scalar_select %p2766_p6, 1, 0 }
  0x10   : > { %p227_p8 = scmp.lt.s32.totalorder %s2660_s30, 5  ;;  %p3175_p9 = scmp.eq.s32.totalorder %s2745_s9, 0 }
  0x11   : > { %3187 = sst [smem:[#allocation15_spill]] %s3186_s16  ;;  %s2662_s18 = smov [#allocation5]  }
  0x12   : > { %p2773_p10 = pnand %p2092_p7, %p227_p8  ;;  %s256_s19 = sshll.u32 %s2662_s18, 4  ;;  %s2779_s19 = int_to_ptr.vmem [resolvable:$true] %s256_s19 }
  0x13   : > { %s2663_s21 = smov [#allocation2]   ;;  %s2664_s23 = smov [#allocation7]  }
  0x14   : > { %s3188_s17 = scalar_select %p2773_p10, 1, 0 }
  0x15   : > { %p2380_p11 = pneg %p2773_p10  ;;  %s243_s22 = sshll.u32 %s2663_s21, 4  ;;  %s2787_s22 = int_to_ptr.vmem [resolvable:$true] %s243_s22 }
  0x16   : > { %s2789_s24 = sshll.u32 %s2664_s23, 4  ;;  %s2506_s10 = scalar_lea.hbm %s3170_s4, 512  ;;  %s270_s24 = int_to_ptr.vmem [resolvable:$true] %s2789_s24 }
  0x17   : > { %p2783_p12 = pnand %p3175_p9, %p2380_p11  ;;  %p2507_p13 = scmp.ne.s32.totalorder %s3170_s4, %s2506_s10 }
  0x18   : > { %p2513_p3 = scmp.lt.u32.totalorder %s2506_s10, %s3170_s4 }
  0x19   : > { %p2799_p0 = pneg %p2783_p12 }
  0x1b   : > { %p2509_p1 = pnand %p2799_p0, %p2507_p13 }
  0x1d   : > { %p2510_p2 = pneg %p2509_p1 }
  0x1f   : > { %p2515_p4 = pnand %p2513_p3, %p2510_p2 }
  0x21   : > { %2518 = shalt.err (!%p2515_p4)
}
  0x22   : > { %s2519_s25 = scalar_lea.vmem %s2779_s19, 512  ;;  %p2527_p9 = scmp.lt.s32.totalorder %s2779_s19, %s2779_s19 }
  0x23   : > { %p2520_p7 = scmp.ne.s32.totalorder %s2779_s19, %s2519_s25  ;;  %p2528_p6 = scmp.lt.s32.totalorder %s2519_s25, %s2519_s25 }
  0x25   : > { %p2522_p8 = pnand %p2520_p7, %p2799_p0  ;;  %p2529_p13 = por %p2528_p6, %p2527_p9 }
  0x27   : > { %p2523_p11 = pneg %p2522_p8 }
  0x29   : > { %p2530_p1 = pnand %p2529_p13, %p2523_p11 }
  0x2b   : > { %2533 = shalt.err (!%p2530_p1)
}
  0x2c   : > { %s2665_s26 = smov 128   ;;  %s2666_s10 = smov 8  }
  0x2d   : > { %2386 = dma.hbm_to_vmem [thread:$0]  (!%p2783_p12), %s3170_s4, 512, %s2779_s19, [#allocation6], %s2665_s26, %s2665_s26, %s2666_s10  }
  0x2e   : > { %s2534_s25 = scalar_lea.hbm %s3168_s2, 128 }
  0x2f   : > { %p2535_p6 = scmp.ne.s32.totalorder %s3168_s2, %s2534_s25  ;;  %p2541_p3 = scmp.lt.u32.totalorder %s2534_s25, %s3168_s2 }
  0x31   : > { %p2537_p9 = pnand %p2535_p6, %p2799_p0 }
  0x33   : > { %p2538_p2 = pneg %p2537_p9 }
  0x35   : > { %p2543_p4 = pnand %p2541_p3, %p2538_p2 }
  0x37   : > { %2546 = shalt.err (!%p2543_p4)
}
  0x38   : > { %s2547_s19 = scalar_lea.vmem %s2787_s22, 128  ;;  %p2555_p13 = scmp.lt.s32.totalorder %s2787_s22, %s2787_s22 }
  0x39   : > { %p2548_p7 = scmp.ne.s32.totalorder %s2787_s22, %s2547_s19  ;;  %p2556_p1 = scmp.lt.s32.totalorder %s2547_s19, %s2547_s19 }
  0x3b   : > { %p2550_p8 = pnand %p2548_p7, %p2799_p0  ;;  %p2557_p6 = por %p2556_p1, %p2555_p13 }
  0x3d   : > { %p2551_p11 = pneg %p2550_p8 }
  0x3f   : > { %p2558_p9 = pnand %p2557_p6, %p2551_p11 }
  0x41   : > { %2561 = shalt.err (!%p2558_p9)
}
  0x42   : > { %2383 = dma.hbm_to_vmem [thread:$0]  (!%p2783_p12), %s3168_s2, 128, %s2787_s22, [#allocation3]  }
  0x43   : > { %s2562_s12 = scalar_lea.hbm %s3171_s5, 512 }
  0x44   : > { %p2563_p2 = scmp.ne.s32.totalorder %s3171_s5, %s2562_s12  ;;  %p2569_p7 = scmp.lt.u32.totalorder %s2562_s12, %s3171_s5 }
  0x46   : > { %p2565_p3 = pnand %p2563_p2, %p2799_p0 }
  0x48   : > { %p2566_p4 = pneg %p2565_p3 }
  0x4a   : > { %p2571_p8 = pnand %p2569_p7, %p2566_p4 }
  0x4c   : > { %2574 = shalt.err (!%p2571_p8)
}
  0x4d   : > { %s2575_s19 = scalar_lea.vmem %s270_s24, 512  ;;  %p2583_p6 = scmp.lt.s32.totalorder %s270_s24, %s270_s24 }
  0x4e   : > { %p2576_p11 = scmp.ne.s32.totalorder %s270_s24, %s2575_s19  ;;  %p2584_p9 = scmp.lt.s32.totalorder %s2575_s19, %s2575_s19 }
  0x50   : > { %p2578_p13 = pnand %p2576_p11, %p2799_p0  ;;  %p2585_p5 = por %p2584_p9, %p2583_p6 }
  0x52   : > { %p2579_p1 = pneg %p2578_p13 }
  0x54   : > { %p2586_p10 = pnand %p2585_p5, %p2579_p1 }
  0x56   : > { %2589 = shalt.err (!%p2586_p10)
}
  0x57   : > { %2389 = dma.hbm_to_vmem [thread:$0]  (!%p2783_p12), %s3171_s5, 512, %s270_s24, [#allocation6], %s2665_s26, %s2665_s26, %s2666_s10  }
  0x58   : > { %p3191_p2 = scmp.ne.s32.totalorder %s3188_s17, 0 }
  0x59   : > { %p3192_p0 = scmp.eq.s32.totalorder (!%p3191_p2), %s2745_s9, 0 }
  0x5a   : > { %298 = sbr.rel (%p3191_p2) target bundleno = 7077 (0x1ba5), region = 52 }
  0x61   : > { %2635 = dma.done.wait (%p3192_p0), [#allocation3], 128   ;;  %p3193_p3 = pmov %p3192_p0 }
  0x62   : > { %p3194_p5 = pmov %p3192_p0 }
  0x63   : > { %2637 = vsyncadd (%p3193_p3), [#allocation3], 4294967168 }
  0x64   : > { %2639 = dma.done.wait (%p3194_p5), [#allocation6], 1024   ;;  %p3195_p10 = pmov %p3192_p0 }
  0x65   : > { %p338_p4 = scmp.lt.s32.totalorder %s2745_s9, 3  ;;  %v2667_v0 = vmov 0.0   ;;  %vm2668_vm0 = vmmov 0   ;;  %vm350_vm1 = vcmask 64512   ;;  %v345_v1 = vld [vmem:[#allocation2] sm:$0xff]  ;;  %v346_v3 = vlaneseq  ;;  %s2669_s14 = smov 32  }
  0x66   : > { %2641 = vsyncadd (%p3195_p10), [#allocation6], 4294966272  ;;  %2181 = vmatprep.subr.mxu0 %v2667_v0  ;;  %2183 = vmatprep.mubr.msk.f32.mxu0 %vm2668_vm0, %v2667_v0  ;;  %v549_v6 = vld [vmem:[%s3169_s3] sm:$0x3]  ;;  %s2670_s13 = smov 48   ;;  %s2672_s21 = smov 80  }
  0x67   : > { %s339_s17 = scalar_select %p338_p4, %s2745_s9, 3  ;;  %2186 = vmatprep.subr.mxu1 %v2667_v0  ;;  %2188 = vmatprep.mubr.msk.f32.mxu1 %vm2668_vm0, %v2667_v0  ;;  %v2894_v4 = vshrl.u32 %v346_v3, 7  ;;  %v2903_v8 = vld [vmem:[%s3173_s7] sm:$0xff]  ;;  %v2671_v15 = vmov 1966171168   ;;  %vm599_vm10 = vcmask 130048  }
  0x68   : > { %2182 = vmatpush3.msra.mxu0 %v345_v1  ;;  %v427_v16 = vunpack.c.l.s4 %v2671_v15  ;;  %s2673_s23 = smov 96   ;;  %vm666_vm11 = vcmask 1041409   ;;  %vm668_vm12 = vcmask 1042434   ;;  %vm670_vm13 = vcmask 1043459   ;;  %s2674_s22 = smov 112  }
  0x69   : > { %s2101_s20 = sshll.u32 %s339_s17, 3  ;;  %2191 = vmatprep.subr.mxu0 %v2667_v0  ;;  %v348_v5 = vsub.s32 0, %v2894_v4  ;;  %v768_v10 = vsub.s32 1, %v2894_v4  ;;  %vm672_vm14 = vcmask 1044484   ;;  %vm674_vm15 = vcmask 1045509   ;;  %s2676_s29 = smov 16  }
  0x6a   : > { %s341_s26 = scalar_lea.vmem %s3166_s0, %s2101_s20  ;;  %v428_v17 = vunpack.c.0.s8 %v427_v16  ;;  %s2677_s17 = smov 64  }
  0x6b   : > { %v342_v2 = vld [vmem:[%s341_s26] sm:$0xff]  ;;  %v554_v7 = vrot.slane %v549_v6, %v348_v5  ;;  %v349_v9 = vrot.slane %v2903_v8, %v348_v5  ;;  %v769_v14 = vrot.slane %v549_v6, %v768_v10  ;;  %s336_s12 = sand.u32 1, %s2652_s28   ;;  %s2122_s25 = sshll.u32 %s2745_s9, 4 }
  0x6c   : > { %2184 = vmatmul.mubr.msk.f32.vlgmr.msra.gmra.mrb[0].mxu0 %vm350_vm1, %v342_v2  ;;  %v431_v18 = vsub.s32 %v428_v17, %v2894_v4  ;;  %s337_s19 = scalar_lea.vmem [#allocation8], %s336_s12  ;;  %s1993_s20 = scalar_lea.sflag [#allocation4], %s336_s12 }
  0x6d   : > { %2193 = vmatprep.mubr.msk.f32.mxu0 %vm2668_vm0, %v2667_v0  ;;  %556 = vrot.lane.b32.xlu1 %v554_v7, %s2669_s14  ;;  %p3196_p7 = scmp.ne.s32.totalorder %s3185_s15, 0  ;;  %s2678_s9 = smov [#allocation8]  }
  0x6e   : > { %s2594_s18 = sshll.u32 %s2678_s9, 4  ;;  %s2595_s18 = int_to_ptr.vmem [resolvable:$false] %s2594_s18 }
  0x6f   : > { %s2596_s26 = scalar_lea.vmem %s2595_s18, 32 }
  0xdf   : > { %v557_v16 = vpop.permute.xlu1 %556 }
 0x13f   : > { %v420_v11 = vpop.f32.mrb[0].mxu0 }
 0x140   : > { %v2907_v12 = vadd.f32 %v420_v11, %v349_v9  ;;  %v2185_v13 = vpop.f32.mrb[1].mxu0 }
 0x142   : > { %514 = vrot.lane.b32.xlu0 %v2907_v12, %s2669_s14  ;;  %2187 = vmatpush3.msra.mxu1 %v2907_v12  ;;  %v432_v19 = vrot.slane %v2907_v12, %v431_v18  ;;  %v425_v20 = vcombine.high %v2907_v12, %v2907_v12 }
 0x144   : > { %v440_v21 = vcombine.high %v432_v19, %v432_v19  ;;  %v439_v22 = vrot.slane %v425_v20, %v431_v18  ;;  %v448_v23 = vrot.slane %v432_v19, %v431_v18 }
 0x146   : > { %771 = vrot.lane.b32.xlu0 %v769_v14, %s2670_s13  ;;  %v462_v24 = vrot.slane %v440_v21, %v431_v18  ;;  %v441_v25 = vcombine.high %v439_v22, %v439_v22  ;;  %v455_v26 = vrot.slane %v439_v22, %v431_v18  ;;  %v470_v27 = vcombine.high %v448_v23, %v448_v23 }
 0x147   : > { %v477_v31 = vrot.slane %v448_v23, %v348_v5 }
 0x148   : > { %v472_v28 = vcombine.high %v462_v24, %v462_v24  ;;  %v469_v29 = vrot.slane %v441_v25, %v431_v18  ;;  %v471_v30 = vcombine.high %v455_v26, %v455_v26  ;;  %v481_v32 = vrot.slane %v462_v24, %v348_v5 }
 0x149   : > { %v485_v33 = vrot.slane %v470_v27, %v348_v5  ;;  %v493_v36 = vrot.slane %v455_v26, %v348_v5 }
 0x14a   : > { %v489_v34 = vrot.slane %v472_v28, %v348_v5  ;;  %v497_v37 = vrot.slane %v469_v29, %v348_v5  ;;  %v473_v38 = vcombine.high %v469_v29, %v469_v29  ;;  %v501_v45 = vrot.slane %v471_v30, %v348_v5 }
 0x14c   : > { %v505_v53 = vrot.slane %v473_v38, %v348_v5 }
 0x1b4   : > { %v515_v35 = vpop.permute.xlu0 %514 }
 0x1b5   : > { %v517_v39 = vadd.f32 %v515_v35, %v477_v31  ;;  %v518_v40 = vadd.f32 %v515_v35, %v481_v32  ;;  %v519_v41 = vadd.f32 %v515_v35, %v485_v33  ;;  %v520_v42 = vadd.f32 %v515_v35, %v489_v34 }
 0x1b6   : > { %v521_v43 = vadd.f32 %v515_v35, %v493_v36  ;;  %v522_v44 = vadd.f32 %v515_v35, %v497_v37  ;;  %v523_v56 = vadd.f32 %v515_v35, %v501_v45  ;;  %v524_v60 = vadd.f32 %v515_v35, %v505_v53 }
 0x1b7   : > { %vm525_vm2 = vcmp.gt.f32.partialorder %v517_v39, 0.0  ;;  %v533_v46 = vmul.f32 0.2, %v517_v39  ;;  %vm526_vm3 = vcmp.gt.f32.partialorder %v518_v40, 0.0  ;;  %v534_v47 = vmul.f32 0.2, %v518_v40 }
 0x1b8   : > { %v772_v48 = vpop.permute.xlu0 %771  ;;  %vm527_vm4 = vcmp.gt.f32.partialorder %v519_v41, 0.0  ;;  %v535_v49 = vmul.f32 0.2, %v519_v41  ;;  %vm528_vm5 = vcmp.gt.f32.partialorder %v520_v42, 0.0  ;;  %v536_v50 = vmul.f32 0.2, %v520_v42 }
 0x1b9   : > { %v541_v51 = vsel %vm525_vm2, %v517_v39, %v533_v46  ;;  %v542_v52 = vsel %vm526_vm3, %v518_v40, %v534_v47  ;;  %v537_v59 = vmul.f32 0.2, %v521_v43  ;;  %vm529_vm6 = vcmp.gt.f32.partialorder %v521_v43, 0.0 }
 0x1ba   : > { %v774_v54 = vmul.f32 %v772_v48, %v541_v51  ;;  %v775_v55 = vmul.f32 %v772_v48, %v542_v52  ;;  %v543_v57 = vsel %vm527_vm4, %v519_v41, %v535_v49  ;;  %v544_v58 = vsel %vm528_vm5, %v520_v42, %v536_v50 }
 0x1bb   : > { %vm530_vm7 = vcmp.gt.f32.partialorder %v522_v44, 0.0  ;;  %v538_v61 = vmul.f32 0.2, %v522_v44  ;;  %v776_v62 = vmul.f32 %v772_v48, %v543_v57  ;;  %v777_v63 = vmul.f32 %v772_v48, %v544_v58 }
 0x1bc   : > { %790 = vrot.lane.b32.xlu1 %v774_v54, %s2672_s21  ;;  %792 = vrot.lane.b32.xlu0 %v775_v55, %s2672_s21  ;;  %v545_v1 = vsel %vm529_vm6, %v521_v43, %v537_v59  ;;  %v539_v6 = vmul.f32 0.2, %v523_v56  ;;  %v540_v7 = vmul.f32 0.2, %v524_v60  ;;  %vm531_vm8 = vcmp.gt.f32.partialorder %v523_v56, 0.0 }
 0x1bd   : > { %v546_v2 = vsel %vm530_vm7, %v522_v44, %v538_v61  ;;  %vm532_vm9 = vcmp.gt.f32.partialorder %v524_v60, 0.0  ;;  %v778_v5 = vmul.f32 %v772_v48, %v545_v1  ;;  %v559_v17 = vmul.f32 %v557_v16, %v541_v51 }
 0x1be   : > { %v779_v9 = vmul.f32 %v772_v48, %v546_v2  ;;  %v547_v11 = vsel %vm531_vm8, %v523_v56, %v539_v6  ;;  %v548_v13 = vsel %vm532_vm9, %v524_v60, %v540_v7  ;;  %v560_v18 = vmul.f32 %v557_v16, %v542_v52 }
 0x1bf   : > { %v780_v14 = vmul.f32 %v772_v48, %v547_v11  ;;  %v781_v15 = vmul.f32 %v772_v48, %v548_v13  ;;  %v561_v19 = vmul.f32 %v557_v16, %v543_v57  ;;  %v562_v20 = vmul.f32 %v557_v16, %v544_v58 }
 0x1c0   : > { %794 = vrot.lane.b32.xlu1 %v776_v62, %s2672_s21  ;;  %796 = vrot.lane.b32.xlu0 %v777_v63, %s2672_s21  ;;  %v563_v21 = vmul.f32 %v557_v16, %v545_v1  ;;  %v565_v22 = vmul.f32 %v557_v16, %v547_v11  ;;  %v564_v23 = vmul.f32 %v557_v16, %v546_v2  ;;  %v633_v57 = vand.u32 127, %v346_v3 }
 0x1c1   : > { %v566_v24 = vmul.f32 %v557_v16, %v548_v13  ;;  %vm676_vm2 = vcmask 1046534   ;;  %vm678_vm3 = vcmask 1047559  }
 0x1c2   : > { %v636_v60 = vsub.s32 %v633_v57, %v2894_v4 }
 0x1c4   : > { %798 = vrot.lane.b32.xlu1 %v778_v5, %s2672_s21  ;;  %800 = vrot.lane.b32.xlu0 %v779_v9, %s2672_s21 }
 0x1c8   : > { %802 = vrot.lane.b32.xlu1 %v780_v14, %s2672_s21  ;;  %804 = vrot.lane.b32.xlu0 %v781_v15, %s2672_s21 }
 0x1cc   : > { %575 = vrot.lane.b32.xlu1 %v559_v17, %s2673_s23  ;;  %577 = vrot.lane.b32.xlu0 %v560_v18, %s2673_s23  ;;  %v343_v18 = vld [vmem:[%s3167_s1] sm:$0xff] }
 0x1cd   : > { %vm550_vm4 = vcmp.gt.f32.partialorder %v343_v18, 0.0  ;;  %v982_v18 = vld [vmem:[#allocation5 + $0x18] sm:$0xff] }
 0x1d0   : > { %579 = vrot.lane.b32.xlu1 %v561_v19, %s2673_s23  ;;  %581 = vrot.lane.b32.xlu0 %v562_v20, %s2673_s23 }
 0x1d4   : > { %583 = vrot.lane.b32.xlu1 %v563_v21, %s2673_s23  ;;  %587 = vrot.lane.b32.xlu0 %v565_v22, %s2673_s23 }
 0x1d8   : > { %585 = vrot.lane.b32.xlu1 %v564_v23, %s2673_s23 }
 0x1dc   : > { %589 = vrot.lane.b32.xlu1 %v566_v24, %s2673_s23 }
 0x22e   : > { %v791_v25 = vpop.permute.xlu1 %790  ;;  %v793_v26 = vpop.permute.xlu0 %792 }
 0x22f   : > { %v814_v27 = vsel %vm599_vm10, %v791_v25, 0.0  ;;  %v817_v28 = vsel %vm599_vm10, %v793_v26, 0.0 }
 0x230   : > { %815 = vadd.xlane.f32.xlu0 %v814_v27  ;;  %818 = vadd.xlane.f32.xlu1 %v817_v28 }
 0x232   : > { %v795_v29 = vpop.permute.xlu1 %794  ;;  %v797_v30 = vpop.permute.xlu0 %796 }
 0x233   : > { %v823_v31 = vsel %vm599_vm10, %v797_v30, 0.0  ;;  %v820_v32 = vsel %vm599_vm10, %v795_v29, 0.0 }
 0x234   : > { %824 = vadd.xlane.f32.xlu0 %v823_v31  ;;  %821 = vadd.xlane.f32.xlu1 %v820_v32 }
 0x236   : > { %v799_v33 = vpop.permute.xlu1 %798  ;;  %v801_v34 = vpop.permute.xlu0 %800 }
 0x237   : > { %v826_v35 = vsel %vm599_vm10, %v799_v33, 0.0  ;;  %v829_v39 = vsel %vm599_vm10, %v801_v34, 0.0 }
 0x238   : > { %827 = vadd.xlane.f32.xlu1 %v826_v35 }
 0x23a   : > { %v803_v36 = vpop.permute.xlu1 %802  ;;  %v805_v37 = vpop.permute.xlu0 %804 }
 0x23b   : > { %v832_v38 = vsel %vm599_vm10, %v803_v36, 0.0  ;;  %v835_v42 = vsel %vm599_vm10, %v805_v37, 0.0 }
 0x23c   : > { %833 = vadd.xlane.f32.xlu0 %v832_v38  ;;  %830 = vadd.xlane.f32.xlu1 %v829_v39 }
 0x23e   : > { %v576_v40 = vpop.permute.xlu1 %575  ;;  %v578_v43 = vpop.permute.xlu0 %577 }
 0x23f   : > { %v600_v41 = vsel %vm599_vm10, %v576_v40, 0.0  ;;  %v603_v45 = vsel %vm599_vm10, %v578_v43, 0.0 }
 0x240   : > { %601 = vadd.xlane.f32.xlu0 %v600_v41  ;;  %836 = vadd.xlane.f32.xlu1 %v835_v42 }
 0x242   : > { %v580_v44 = vpop.permute.xlu1 %579  ;;  %v582_v48 = vpop.permute.xlu0 %581 }
 0x243   : > { %v606_v47 = vsel %vm599_vm10, %v580_v44, 0.0  ;;  %v609_v50 = vsel %vm599_vm10, %v582_v48, 0.0 }
 0x244   : > { %604 = vadd.xlane.f32.xlu0 %v603_v45 }
 0x246   : > { %v584_v46 = vpop.permute.xlu1 %583  ;;  %v588_v55 = vpop.permute.xlu0 %587 }
 0x247   : > { %v612_v53 = vsel %vm599_vm10, %v584_v46, 0.0  ;;  %v618_v56 = vsel %vm599_vm10, %v588_v55, 0.0 }
 0x248   : > { %607 = vadd.xlane.f32.xlu0 %v606_v47 }
 0x24a   : > { %v586_v49 = vpop.permute.xlu1 %585 }
 0x24b   : > { %v615_v51 = vsel %vm599_vm10, %v586_v49, 0.0 }
 0x24c   : > { %610 = vadd.xlane.f32.xlu0 %v609_v50  ;;  %616 = vadd.xlane.f32.xlu1 %v615_v51 }
 0x24e   : > { %v590_v52 = vpop.permute.xlu1 %589 }
 0x24f   : > { %v621_v54 = vsel %vm599_vm10, %v590_v52, 0.0 }
 0x250   : > { %613 = vadd.xlane.f32.xlu0 %v612_v53  ;;  %622 = vadd.xlane.f32.xlu1 %v621_v54 }
 0x254   : > { %619 = vadd.xlane.f32.xlu0 %v618_v56 }
 0x2bd   : > { %v816_v58 = vpop.xlane.xlu0 %815  ;;  %v819_v59 = vpop.xlane.xlu1 %818 }
 0x2be   : > { %v849_v62 = vrot.slane %v816_v58, %v636_v60  ;;  %v853_v63 = vrot.slane %v819_v59, %v636_v60 }
 0x2c0   : > { %v878_v7 = vsel %vm666_vm11, %v853_v63, %v849_v62 }
 0x2c1   : > { %v822_v61 = vpop.xlane.xlu1 %821  ;;  %v825_v1 = vpop.xlane.xlu0 %824 }
 0x2c2   : > { %v857_v2 = vrot.slane %v822_v61, %v636_v60  ;;  %v861_v5 = vrot.slane %v825_v1, %v636_v60 }
 0x2c4   : > { %v879_v9 = vsel %vm668_vm12, %v857_v2, %v878_v7  ;;  %v2675_v7 = vmov 0.0|0.0  }
 0x2c5   : > { %v828_v6 = vpop.xlane.xlu1 %827  ;;  %v880_v14 = vsel %vm670_vm13, %v861_v5, %v879_v9  ;;  %v1061_v5 = vld [vmem:[#allocation7] sm:$0xff]  ;;  %v1062_v9 = vld [vmem:[#allocation7 + $0x8] sm:$0xff]  ;;  %2306 = vmatprep.subr.bf16.mxu1 %v2675_v7 }
 0x2c6   : > { %v865_v11 = vrot.slane %v828_v6, %v636_v60 }
 0x2c8   : > { %v881_v16 = vsel %vm672_vm14, %v865_v11, %v880_v14  ;;  %v1063_v11 = vld [vmem:[#allocation7 + $0x10] sm:$0xff]  ;;  %v979_v14 = vld [vmem:[#allocation5] sm:$0xff] }
 0x2c9   : > { %v834_v3 = vpop.xlane.xlu0 %833  ;;  %v831_v13 = vpop.xlane.xlu1 %830 }
 0x2ca   : > { %v869_v15 = vrot.slane %v831_v13, %v636_v60  ;;  %v873_v17 = vrot.slane %v834_v3, %v636_v60  ;;  %v2975_v3 = vpack.c.bf16 %v1062_v9, %v1061_v5  ;;  %v1064_v13 = vld [vmem:[#allocation7 + $0x18] sm:$0xff] }
 0x2cc   : > { %v882_v19 = vsel %vm674_vm15, %v869_v15, %v881_v16  ;;  %v980_v15 = vld [vmem:[#allocation5 + $0x8] sm:$0xff] }
 0x2cd   : > { %v602_v20 = vpop.xlane.xlu0 %601  ;;  %v837_v21 = vpop.xlane.xlu1 %836  ;;  %v883_v23 = vsel %vm676_vm2, %v873_v17, %v882_v19  ;;  %v2307_v16 = vpack.c.bf16 %v980_v15, %v979_v14  ;;  %v981_v17 = vld [vmem:[#allocation5 + $0x10] sm:$0xff]  ;;  %v2978_v19 = vpack.c.bf16 %v1064_v13, %v1063_v11 }
 0x2ce   : > { %v877_v22 = vrot.slane %v837_v21, %v636_v60  ;;  %v637_v33 = vrot.slane %v602_v20, %v636_v60  ;;  %v2310_v20 = vpack.c.bf16 %v982_v18, %v981_v17 }
 0x2d0   : > { %v884_v24 = vsel %vm678_vm3, %v877_v22, %v883_v23 }
 0x2d1   : > { %v605_v25 = vpop.xlane.xlu0 %604  ;;  %v886_v26 = vsel %vm550_vm4, %v884_v24, -1e+30 }
 0x2d2   : > { %v887_v27 = vsel %vm350_vm1, %v886_v26, -inf  ;;  %v641_v29 = vrot.slane %v605_v25, %v636_v60  ;;  %v2993_v25 = vrot.slane %v2903_v8, 2 }
 0x2d3   : > { %888 = vmax.xlane.f32.xlu0 %v887_v27 }
 0x2d4   : > { %v667_v35 = vsel %vm666_vm11, %v641_v29, %v637_v33 }
 0x2d5   : > { %v608_v28 = vpop.xlane.xlu0 %607 }
 0x2d6   : > { %v645_v31 = vrot.slane %v608_v28, %v636_v60 }
 0x2d8   : > { %v669_v37 = vsel %vm668_vm12, %v645_v31, %v667_v35  ;;  %v986_v31 = vrot.slane %v2903_v8, %v768_v10 }
 0x2d9   : > { %v611_v30 = vpop.xlane.xlu0 %610  ;;  %v617_v32 = vpop.xlane.xlu1 %616 }
 0x2da   : > { %v649_v34 = vrot.slane %v611_v30, %v636_v60  ;;  %v657_v42 = vrot.slane %v617_v32, %v636_v60 }
 0x2dc   : > { %v671_v39 = vsel %vm670_vm13, %v649_v34, %v669_v37 }
 0x2dd   : > { %v614_v36 = vpop.xlane.xlu0 %613  ;;  %v623_v41 = vpop.xlane.xlu1 %622 }
 0x2de   : > { %v653_v38 = vrot.slane %v614_v36, %v636_v60  ;;  %v665_v45 = vrot.slane %v623_v41, %v636_v60 }
 0x2e0   : > { %v673_v40 = vsel %vm672_vm14, %v653_v38, %v671_v39 }
 0x2e1   : > { %v620_v43 = vpop.xlane.xlu0 %619  ;;  %v675_v46 = vsel %vm674_vm15, %v657_v42, %v673_v40 }
 0x2e2   : > { %v661_v44 = vrot.slane %v620_v43, %v636_v60 }
 0x2e4   : > { %v677_v47 = vsel %vm676_vm2, %v661_v44, %v675_v46 }
 0x2e5   : > { %v679_v48 = vsel %vm678_vm3, %v665_v45, %v677_v47 }
 0x2e6   : > { %v681_v49 = vsel %vm550_vm4, %v679_v48, -1e+30 }
 0x2e7   : > { %v682_v50 = vsel %vm350_vm1, %v681_v49, -inf }
 0x2e8   : > { %683 = vmax.xlane.f32.xlu1 %v682_v50 }
 0x2f9   : > { %898 = vrot.lane.b32.xlu1 %v2907_v12, %s2674_s22  ;;  %s2005_s22 = sshll.u32 %s337_s19, 4  ;;  %s3126_s22 = int_to_ptr.vmem [resolvable:$true] %s2005_s22 }
 0x2fa   : > { %s2590_s24 = scalar_lea.vmem %s3126_s22, 16  ;;  %p2597_p13 = scmp.lt.s32.totalorder %s3126_s22, %s2595_s18 }
 0x2fb   : > { %p2591_p12 = scmp.ne.s32.totalorder %s3126_s22, %s2590_s24  ;;  %p2598_p1 = scmp.lt.s32.totalorder %s2596_s26, %s2590_s24 }
 0x2fd   : > { %p2592_p8 = pnand %p2591_p12, %p3196_p7  ;;  %p2599_p6 = por %p2598_p1, %p2597_p13 }
 0x2ff   : > { %p2593_p11 = pneg %p2592_p8 }
 0x301   : > { %p2600_p9 = pnand %p2599_p6, %p2593_p11 }
 0x360   : > { %v889_v51 = vpop.xlane.xlu0 %888 }
 0x361   : > { %v890_v52 = vsub.f32 %v886_v26, %v889_v51 }
 0x363   : > { %v891_v53 = vmul.f32 1.442695, %v890_v52 }
 0x365   : > { %2449 = vpow2.f32 %v891_v53 }
 0x36f   : > { %v2450_v54 = vpop.eup %2449 }
 0x370   : > { %v893_v55 = vsel %vm350_vm1, %v2450_v54, 0.0 }
 0x371   : > { %894 = vadd.xlane.f32.xlu0 %v893_v55 }
 0x375   : > { %v684_v56 = vpop.xlane.xlu1 %683 }
 0x376   : > { %v685_v57 = vsub.f32 %v681_v49, %v684_v56 }
 0x378   : > { %v686_v58 = vmul.f32 1.442695, %v685_v57 }
 0x379   : > { %v899_v59 = vpop.permute.xlu1 %898 }
 0x37a   : > { %2451 = vpow2.f32 %v686_v58  ;;  %2192 = vmatpush3.msra.mxu0 %v899_v59 }
 0x37b   : > { %2312 = vmatprep.subr.bf16.mxu0 %v2675_v7 }
 0x384   : > { %v2452_v60 = vpop.eup %2451 }
 0x385   : > { %v688_v61 = vsel %vm350_vm1, %v2452_v60, 0.0 }
 0x386   : > { %689 = vadd.xlane.f32.xlu0 %v688_v61 }
 0x3fe   : > { %v895_v62 = vpop.xlane.xlu0 %894 }
 0x3ff   : > { %2453 = vrcp.f32 %v895_v62 }
 0x409   : > { %v2454_v12 = vpop.eup %2453 }
 0x40a   : > { %v897_v63 = vmul.f32 %v2454_v12, %v2450_v54 }
 0x40c   : > { %2194 = vmatmul.mubr.msk.f32.vlgmr.msra.gmra.mrb[2].mxu0 %vm350_vm1, %v897_v63 }
 0x40d   : > { %2215 = vmatprep.mubr.msk.f32.mxu0 %vm2668_vm0, %v2667_v0  ;;  %2314 = vmatpush3.bf16.msra.mxu0 %v2975_v3 }
 0x40e   : > { %2315 = vmatprep.subr.bf16.mxu0 %v2675_v7 }
 0x411   : > { %2317 = vmatpush3.bf16.msra.mxu0 %v2978_v19 }
 0x412   : > { %2324 = vmatprep.subr.bf16.mxu0 %v2675_v7 }
 0x413   : > { %v690_v1 = vpop.xlane.xlu0 %689 }
 0x414   : > { %2455 = vrcp.f32 %v690_v1  ;;  %2216 = vmatmul.mubr.f32.vlgmr.msra.gmra.mrb[4].mxu0 %v2667_v0 }
 0x415   : > { %2326 = vmatpush3.bf16.msra.mxu0 %v2975_v3  ;;  %2237 = vmatprep.mubr.msk.f32.mxu0 %vm2668_vm0, %v2667_v0 }
 0x416   : > { %2327 = vmatprep.subr.bf16.mxu0 %v2675_v7 }
 0x419   : > { %2329 = vmatpush3.bf16.msra.mxu0 %v2978_v19 }
 0x41a   : > { %2336 = vmatprep.subr.bf16.mxu0 %v2675_v7 }
 0x41e   : > { %v2456_v2 = vpop.eup %2455 }
 0x41f   : > { %v692_v6 = vmul.f32 %v2456_v2, %v2452_v60 }
 0x421   : > { %2189 = vmatmul.mubr.msk.f32.vlgmr.msra.gmra.mrb[0].mxu1 %vm350_vm1, %v692_v6  ;;  %vm987_vm1 = vcmask 261120  }
 0x422   : > { %2204 = vmatprep.mubr.msk.f32.mxu1 %vm2668_vm0, %v2667_v0  ;;  %2308 = vmatpush3.bf16.msra.mxu1 %v2307_v16 }
 0x423   : > { %2309 = vmatprep.subr.bf16.mxu1 %v2675_v7 }
 0x426   : > { %2311 = vmatpush3.bf16.msra.mxu1 %v2310_v20 }
 0x427   : > { %2318 = vmatprep.subr.bf16.mxu1 %v2675_v7 }
 0x4df   : > { %v970_v21 = vpop.f32.mrb[2].mxu0 }
 0x4e0   : > { %975 = vrot.lane.b32.xlu0 %v970_v21, %s2676_s29  ;;  %v2195_v22 = vpop.f32.mrb[3].mxu0 }
 0x4e7   : > { %v1137_v27 = vpop.f32.mrb[4].mxu0 }
 0x4e8   : > { %v1138_v29 = vadd.f32 %v1137_v27, %v2993_v25  ;;  %v2217_v30 = vpop.f32.mrb[5].mxu0 }
 0x4ea   : > { %1149 = vrot.lane.b32.xlu1 %v1138_v29, %s2677_s17 }
 0x4f4   : > { %v762_v23 = vpop.f32.mrb[0].mxu1 }
 0x4f5   : > { %v2190_v24 = vpop.f32.mrb[1].mxu1 }
 0x552   : > { %v976_v26 = vpop.permute.xlu0 %975 }
 0x553   : > { %v978_v28 = vsel %vm599_vm10, %v762_v23, %v976_v26 }
 0x554   : > { %2205 = vmatmul.mubr.msk.f32.vlgmr.msra.gmra.mrb[2].mxu1 %vm987_vm1, %v978_v28 }
 0x555   : > { %2320 = vmatpush3.bf16.msra.mxu1 %v2975_v3  ;;  %2226 = vmatprep.mubr.msk.f32.mxu1 %vm2668_vm0, %v2667_v0 }
 0x556   : > { %2321 = vmatprep.subr.bf16.mxu1 %v2675_v7 }
 0x559   : > { %2323 = vmatpush3.bf16.msra.mxu1 %v2978_v19 }
 0x55a   : > { %2330 = vmatprep.subr.bf16.mxu1 %v2675_v7 }
 0x55c   : > { %v1150_v39 = vpop.permute.xlu1 %1149 }
 0x627   : > { %v1057_v32 = vpop.f32.mrb[2].mxu1 }
 0x628   : > { %v3008_v33 = vadd.f32 %v1057_v32, %v986_v31  ;;  %v2206_v34 = vpop.f32.mrb[3].mxu1 }
 0x62a   : > { %v1141_v35 = vadd.f32 %v1138_v29, %v3008_v33 }
 0x62c   : > { %v2106_v36 = vmul.f32 -1.442695, %v1141_v35 }
 0x62e   : > { %2457 = vpow2.f32 %v2106_v36 }
 0x638   : > { %v2458_v37 = vpop.eup %2457 }
 0x639   : > { %v1145_v38 = vadd.f32 1.0, %v2458_v37 }
 0x63b   : > { %2459 = vrcp.f32 %v1145_v38 }
 0x645   : > { %v2460_v40 = vpop.eup %2459 }
 0x646   : > { %v1152_v41 = vmul.f32 %v2460_v40, %v1150_v39  ;;  %v1159_v10 = vsub.f32 1.0, %v2460_v40  ;;  %v1165_v44 = vmul.f32 0.0, %v2460_v40 }
 0x648   : > { %1154 = vrot.lane.b32.xlu1 %v1152_v41, %s2677_s17 }
 0x6ba   : > { %v1155_v42 = vpop.permute.xlu1 %1154 }
 0x6bb   : > { %v1157_v4 = vadd.f32 %v1155_v42, %v3008_v33 }
 0x6bd   : > { %2461 = vtanh.f32 %v1157_v4 }
 0x6c7   : > { %v2462_v8 = vpop.eup %2461 }
 0x6c8   : > { %1161 = vrot.lane.b32.xlu1 %v2462_v8, %s2673_s23 }
 0x73a   : > { %v1162_v43 = vpop.permute.xlu1 %1161 }
 0x73b   : > { %v1164_v45 = vmul.f32 %v1162_v43, %v1159_v10 }
 0x73d   : > { %v1166_v46 = vadd.f32 %v1165_v44, %v1164_v45 }
 0x73f   : > { %1168 = vrot.lane.b32.xlu0 %v1166_v46, %s2673_s23  ;;  %v1268_v62 = vrot.slane %v1166_v46, 7 }
 0x7b1   : > { %v1169_v47 = vpop.permute.xlu0 %1168 }
 0x7b2   : > { %2227 = vmatmul.mubr.msk.f32.vlgmr.msra.gmra.mrb[4].mxu1 %vm987_vm1, %v1169_v47 }
 0x7b3   : > { %2332 = vmatpush3.bf16.msra.mxu1 %v2975_v3  ;;  %2248 = vmatprep.mubr.msk.f32.mxu1 %vm2668_vm0, %v2667_v0 }
 0x7b4   : > { %2333 = vmatprep.subr.bf16.mxu1 %v2675_v7 }
 0x7b7   : > { %2335 = vmatpush3.bf16.msra.mxu1 %v2978_v19 }
 0x7b8   : > { %2342 = vmatprep.subr.bf16.mxu1 %v2675_v7 }
 0x885   : > { %v1238_v48 = vpop.f32.mrb[4].mxu1 }
 0x886   : > { %v1239_v49 = vadd.f32 %v1238_v48, %v2993_v25  ;;  %v2228_v50 = vpop.f32.mrb[5].mxu1 }
 0x888   : > { %v1243_v51 = vrot.slane %v1239_v49, 7 }
 0x88a   : > { %1252 = vrot.lane.b32.xlu1 %v1243_v51, %s2677_s17  ;;  %v1245_v52 = vadd.f32 %v1243_v51, %v3008_v33 }
 0x88c   : > { %v2108_v53 = vmul.f32 -1.442695, %v1245_v52 }
 0x88e   : > { %2463 = vpow2.f32 %v2108_v53 }
 0x898   : > { %v2464_v54 = vpop.eup %2463 }
 0x899   : > { %v1249_v55 = vadd.f32 1.0, %v2464_v54 }
 0x89b   : > { %2465 = vrcp.f32 %v1249_v55 }
 0x8a5   : > { %v2466_v56 = vpop.eup %2465 }
 0x8a6   : > { %v1262_v12 = vsub.f32 1.0, %v2466_v56  ;;  %v1270_v2 = vmul.f32 %v2466_v56, %v1268_v62 }
 0x8fc   : > { %v1253_v57 = vpop.permute.xlu1 %1252 }
 0x8fd   : > { %v1255_v58 = vmul.f32 %v2466_v56, %v1253_v57 }
 0x8ff   : > { %1257 = vrot.lane.b32.xlu0 %v1255_v58, %s2677_s17 }
 0x971   : > { %v1258_v59 = vpop.permute.xlu0 %1257 }
 0x972   : > { %v1260_v60 = vadd.f32 %v1258_v59, %v3008_v33 }
 0x974   : > { %2467 = vtanh.f32 %v1260_v60 }
 0x97e   : > { %v2468_v61 = vpop.eup %2467 }
 0x97f   : > { %1264 = vrot.lane.b32.xlu1 %v2468_v61, %s2673_s23 }
 0x9f1   : > { %v1265_v63 = vpop.permute.xlu1 %1264 }
 0x9f2   : > { %v1267_v1 = vmul.f32 %v1265_v63, %v1262_v12 }
 0x9f4   : > { %v1271_v6 = vadd.f32 %v1270_v2, %v1267_v1 }
 0x9f6   : > { %v1273_v5 = vrot.slane %v1271_v6, 1  ;;  %v1374_v28 = vrot.slane %v1271_v6, 7 }
 0x9f8   : > { %1274 = vrot.lane.b32.xlu0 %v1273_v5, %s2673_s23 }
 0xa6a   : > { %v1275_v9 = vpop.permute.xlu0 %1274 }
 0xa6b   : > { %2238 = vmatmul.mubr.msk.f32.vlgmr.msra.gmra.mrb[6].mxu0 %vm987_vm1, %v1275_v9 }
 0xa6c   : > { %2338 = vmatpush3.bf16.msra.mxu0 %v2975_v3  ;;  %2259 = vmatprep.mubr.msk.f32.mxu0 %vm2668_vm0, %v2667_v0 }
 0xa6d   : > { %2339 = vmatprep.subr.bf16.mxu0 %v2675_v7 }
 0xa70   : > { %2341 = vmatpush3.bf16.msra.mxu0 %v2978_v19 }
 0xa71   : > { %2348 = vmatprep.subr.bf16.mxu0 %v2675_v7 }
 0xb3e   : > { %v1344_v11 = vpop.f32.mrb[6].mxu0 }
 0xb3f   : > { %v1345_v13 = vadd.f32 %v1344_v11, %v2993_v25  ;;  %v2239_v14 = vpop.f32.mrb[7].mxu0 }
 0xb41   : > { %v1349_v15 = vrot.slane %v1345_v13, 6 }
 0xb43   : > { %1358 = vrot.lane.b32.xlu1 %v1349_v15, %s2677_s17  ;;  %v1351_v16 = vadd.f32 %v1349_v15, %v3008_v33 }
 0xb45   : > { %v2110_v17 = vmul.f32 -1.442695, %v1351_v16 }
 0xb47   : > { %2469 = vpow2.f32 %v2110_v17 }
 0xb51   : > { %v2470_v18 = vpop.eup %2469 }
 0xb52   : > { %v1355_v20 = vadd.f32 1.0, %v2470_v18 }
 0xb54   : > { %2471 = vrcp.f32 %v1355_v20 }
 0xb5e   : > { %v2472_v21 = vpop.eup %2471 }
 0xb5f   : > { %v1368_v29 = vsub.f32 1.0, %v2472_v21  ;;  %v1376_v31 = vmul.f32 %v2472_v21, %v1374_v28 }
 0xbb5   : > { %v1359_v22 = vpop.permute.xlu1 %1358 }
 0xbb6   : > { %v1361_v23 = vmul.f32 %v2472_v21, %v1359_v22 }
 0xbb8   : > { %1363 = vrot.lane.b32.xlu0 %v1361_v23, %s2677_s17 }
 0xc2a   : > { %v1364_v24 = vpop.permute.xlu0 %1363 }
 0xc2b   : > { %v1366_v26 = vadd.f32 %v1364_v24, %v3008_v33 }
 0xc2d   : > { %2473 = vtanh.f32 %v1366_v26 }
 0xc37   : > { %v2474_v27 = vpop.eup %2473 }
 0xc38   : > { %1370 = vrot.lane.b32.xlu1 %v2474_v27, %s2673_s23 }
 0xcaa   : > { %v1371_v30 = vpop.permute.xlu1 %1370 }
 0xcab   : > { %v1373_v32 = vmul.f32 %v1371_v30, %v1368_v29 }
 0xcad   : > { %v1377_v34 = vadd.f32 %v1376_v31, %v1373_v32 }
 0xcaf   : > { %v1379_v35 = vrot.slane %v1377_v34, 2  ;;  %v1480_v48 = vrot.slane %v1377_v34, 7 }
 0xcb1   : > { %1380 = vrot.lane.b32.xlu0 %v1379_v35, %s2673_s23 }
 0xd23   : > { %v1381_v36 = vpop.permute.xlu0 %1380 }
 0xd24   : > { %2249 = vmatmul.mubr.msk.f32.vlgmr.msra.gmra.mrb[6].mxu1 %vm987_vm1, %v1381_v36 }
 0xd25   : > { %2344 = vmatpush3.bf16.msra.mxu1 %v2975_v3  ;;  %2270 = vmatprep.mubr.msk.f32.mxu1 %vm2668_vm0, %v2667_v0 }
 0xd26   : > { %2345 = vmatprep.subr.bf16.mxu1 %v2675_v7 }
 0xd29   : > { %2347 = vmatpush3.bf16.msra.mxu1 %v2978_v19 }
 0xd2a   : > { %2354 = vmatprep.subr.bf16.mxu1 %v2675_v7 }
 0xdf7   : > { %v1450_v37 = vpop.f32.mrb[6].mxu1 }
 0xdf8   : > { %v1451_v38 = vadd.f32 %v1450_v37, %v2993_v25  ;;  %v2250_v39 = vpop.f32.mrb[7].mxu1 }
 0xdfa   : > { %v1455_v40 = vrot.slane %v1451_v38, 5 }
 0xdfc   : > { %1464 = vrot.lane.b32.xlu1 %v1455_v40, %s2677_s17  ;;  %v1457_v41 = vadd.f32 %v1455_v40, %v3008_v33 }
 0xdfe   : > { %v2112_v42 = vmul.f32 -1.442695, %v1457_v41 }
 0xe00   : > { %2475 = vpow2.f32 %v2112_v42 }
 0xe0a   : > { %v2476_v4 = vpop.eup %2475 }
 0xe0b   : > { %v1461_v8 = vadd.f32 1.0, %v2476_v4 }
 0xe0d   : > { %2477 = vrcp.f32 %v1461_v8 }
 0xe17   : > { %v2478_v10 = vpop.eup %2477 }
 0xe18   : > { %v1474_v49 = vsub.f32 1.0, %v2478_v10  ;;  %v1482_v51 = vmul.f32 %v2478_v10, %v1480_v48 }
 0xe6e   : > { %v1465_v43 = vpop.permute.xlu1 %1464 }
 0xe6f   : > { %v1467_v44 = vmul.f32 %v2478_v10, %v1465_v43 }
 0xe71   : > { %1469 = vrot.lane.b32.xlu0 %v1467_v44, %s2677_s17 }
 0xee3   : > { %v1470_v45 = vpop.permute.xlu0 %1469 }
 0xee4   : > { %v1472_v46 = vadd.f32 %v1470_v45, %v3008_v33 }
 0xee6   : > { %2479 = vtanh.f32 %v1472_v46 }
 0xef0   : > { %v2480_v47 = vpop.eup %2479 }
 0xef1   : > { %1476 = vrot.lane.b32.xlu1 %v2480_v47, %s2673_s23 }
 0xf63   : > { %v1477_v50 = vpop.permute.xlu1 %1476 }
 0xf64   : > { %v1479_v52 = vmul.f32 %v1477_v50, %v1474_v49 }
 0xf66   : > { %v1483_v53 = vadd.f32 %v1482_v51, %v1479_v52 }
 0xf68   : > { %v1485_v54 = vrot.slane %v1483_v53, 3  ;;  %v1586_v11 = vrot.slane %v1483_v53, 7 }
 0xf6a   : > { %1486 = vrot.lane.b32.xlu0 %v1485_v54, %s2673_s23 }
 0xfdc   : > { %v1487_v55 = vpop.permute.xlu0 %1486 }
 0xfdd   : > { %2260 = vmatmul.mubr.msk.f32.vlgmr.msra.gmra.mrb[8].mxu0 %vm987_vm1, %v1487_v55 }
 0xfde   : > { %2350 = vmatpush3.bf16.msra.mxu0 %v2975_v3  ;;  %2281 = vmatprep.mubr.msk.f32.mxu0 %vm2668_vm0, %v2667_v0 }
 0xfdf   : > { %2351 = vmatprep.subr.bf16.mxu0 %v2675_v7 }
 0xfe2   : > { %2353 = vmatpush3.bf16.msra.mxu0 %v2978_v19 }
 0xfe3   : > { %2360 = vmatprep.subr.bf16.mxu0 %v2675_v7 }
0x10b0   : > { %v1556_v56 = vpop.f32.mrb[8].mxu0 }
0x10b1   : > { %v1557_v57 = vadd.f32 %v1556_v56, %v2993_v25  ;;  %v2261_v58 = vpop.f32.mrb[9].mxu0 }
0x10b3   : > { %v1561_v59 = vrot.slane %v1557_v57, 4 }
0x10b5   : > { %1570 = vrot.lane.b32.xlu1 %v1561_v59, %s2677_s17  ;;  %v1563_v60 = vadd.f32 %v1561_v59, %v3008_v33 }
0x10b7   : > { %v2114_v61 = vmul.f32 -1.442695, %v1563_v60 }
0x10b9   : > { %2481 = vpow2.f32 %v2114_v61 }
0x10c3   : > { %v2482_v62 = vpop.eup %2481 }
0x10c4   : > { %v1567_v12 = vadd.f32 1.0, %v2482_v62 }
0x10c6   : > { %2483 = vrcp.f32 %v1567_v12 }
0x10d0   : > { %v2484_v63 = vpop.eup %2483 }
0x10d1   : > { %v1580_v13 = vsub.f32 1.0, %v2484_v63  ;;  %v1588_v15 = vmul.f32 %v2484_v63, %v1586_v11 }
0x1127   : > { %v1571_v1 = vpop.permute.xlu1 %1570 }
0x1128   : > { %v1573_v2 = vmul.f32 %v2484_v63, %v1571_v1 }
0x112a   : > { %1575 = vrot.lane.b32.xlu0 %v1573_v2, %s2677_s17 }
0x119c   : > { %v1576_v6 = vpop.permute.xlu0 %1575 }
0x119d   : > { %v1578_v5 = vadd.f32 %v1576_v6, %v3008_v33 }
0x119f   : > { %2485 = vtanh.f32 %v1578_v5 }
0x11a9   : > { %v2486_v9 = vpop.eup %2485 }
0x11aa   : > { %1582 = vrot.lane.b32.xlu1 %v2486_v9, %s2673_s23 }
0x121c   : > { %v1583_v14 = vpop.permute.xlu1 %1582 }
0x121d   : > { %v1585_v16 = vmul.f32 %v1583_v14, %v1580_v13 }
0x121f   : > { %v1589_v17 = vadd.f32 %v1588_v15, %v1585_v16  ;;  %v1909_v16 = vld [vmem:[%s3172_s6 + $0x8] sm:$0xff] }
0x1221   : > { %v1591_v18 = vrot.slane %v1589_v17, 4  ;;  %v1692_v35 = vrot.slane %v1589_v17, 7  ;;  %v1910_v17 = vld [vmem:[%s3172_s6 + $0x10] sm:$0xff] }
0x1223   : > { %1592 = vrot.lane.b32.xlu0 %v1591_v18, %s2673_s23 }
0x1295   : > { %v1593_v20 = vpop.permute.xlu0 %1592 }
0x1296   : > { %2271 = vmatmul.mubr.msk.f32.vlgmr.msra.gmra.mrb[8].mxu1 %vm987_vm1, %v1593_v20  ;;  %v1911_v20 = vld [vmem:[%s3172_s6 + $0x18] sm:$0xff] }
0x1297   : > { %2356 = vmatpush3.bf16.msra.mxu1 %v2975_v3  ;;  %2292 = vmatprep.mubr.msk.f32.mxu1 %vm2668_vm0, %v2667_v0 }
0x1298   : > { %2357 = vmatprep.subr.bf16.mxu1 %v2675_v7 }
0x129b   : > { %2359 = vmatpush3.bf16.msra.mxu1 %v2978_v19 }
0x1369   : > { %v1662_v21 = vpop.f32.mrb[8].mxu1 }
0x136a   : > { %v1663_v22 = vadd.f32 %v1662_v21, %v2993_v25  ;;  %v2272_v23 = vpop.f32.mrb[9].mxu1 }
0x136c   : > { %v1667_v24 = vrot.slane %v1663_v22, 3 }
0x136e   : > { %1676 = vrot.lane.b32.xlu1 %v1667_v24, %s2677_s17  ;;  %v1669_v26 = vadd.f32 %v1667_v24, %v3008_v33 }
0x1370   : > { %v2116_v27 = vmul.f32 -1.442695, %v1669_v26 }
0x1372   : > { %2487 = vpow2.f32 %v2116_v27 }
0x137c   : > { %v2488_v28 = vpop.eup %2487 }
0x137d   : > { %v1673_v3 = vadd.f32 1.0, %v2488_v28 }
0x137f   : > { %2489 = vrcp.f32 %v1673_v3 }
0x1389   : > { %v2490_v29 = vpop.eup %2489 }
0x138a   : > { %v1686_v36 = vsub.f32 1.0, %v2490_v29  ;;  %v1694_v38 = vmul.f32 %v2490_v29, %v1692_v35 }
0x13e0   : > { %v1677_v30 = vpop.permute.xlu1 %1676 }
0x13e1   : > { %v1679_v31 = vmul.f32 %v2490_v29, %v1677_v30 }
0x13e3   : > { %1681 = vrot.lane.b32.xlu0 %v1679_v31, %s2677_s17 }
0x1455   : > { %v1682_v19 = vpop.permute.xlu0 %1681 }
0x1456   : > { %v1684_v32 = vadd.f32 %v1682_v19, %v3008_v33 }
0x1458   : > { %2491 = vtanh.f32 %v1684_v32 }
0x1462   : > { %v2492_v34 = vpop.eup %2491 }
0x1463   : > { %1688 = vrot.lane.b32.xlu1 %v2492_v34, %s2673_s23 }
0x14d5   : > { %v1689_v37 = vpop.permute.xlu1 %1688 }
0x14d6   : > { %v1691_v39 = vmul.f32 %v1689_v37, %v1686_v36 }
0x14d8   : > { %v1695_v40 = vadd.f32 %v1694_v38, %v1691_v39 }
0x14da   : > { %v1697_v41 = vrot.slane %v1695_v40, 5  ;;  %v1798_v53 = vrot.slane %v1695_v40, 7 }
0x14dc   : > { %1698 = vrot.lane.b32.xlu0 %v1697_v41, %s2673_s23 }
0x154e   : > { %v1699_v42 = vpop.permute.xlu0 %1698 }
0x154f   : > { %2282 = vmatmul.mubr.msk.f32.vlgmr.msra.gmra.mrb[10].mxu0 %vm987_vm1, %v1699_v42 }
0x1550   : > { %2303 = vmatprep.mubr.msk.f32.mxu0 %vm2668_vm0, %v2667_v0  ;;  %vm1990_vm0 = vcmask 57344  }
0x1622   : > { %v1768_v4 = vpop.f32.mrb[10].mxu0 }
0x1623   : > { %v1769_v8 = vadd.f32 %v1768_v4, %v2993_v25  ;;  %v2283_v10 = vpop.f32.mrb[11].mxu0 }
0x1625   : > { %v1773_v43 = vrot.slane %v1769_v8, 2 }
0x1627   : > { %1782 = vrot.lane.b32.xlu1 %v1773_v43, %s2677_s17  ;;  %v1775_v44 = vadd.f32 %v1773_v43, %v3008_v33 }
0x1629   : > { %v2118_v45 = vmul.f32 -1.442695, %v1775_v44 }
0x162b   : > { %2493 = vpow2.f32 %v2118_v45 }
0x1635   : > { %v2494_v46 = vpop.eup %2493 }
0x1636   : > { %v1779_v47 = vadd.f32 1.0, %v2494_v46 }
0x1638   : > { %2495 = vrcp.f32 %v1779_v47 }
0x1642   : > { %v2496_v48 = vpop.eup %2495 }
0x1643   : > { %v1792_v54 = vsub.f32 1.0, %v2496_v48  ;;  %v1800_v56 = vmul.f32 %v2496_v48, %v1798_v53 }
0x1699   : > { %v1783_v49 = vpop.permute.xlu1 %1782 }
0x169a   : > { %v1785_v50 = vmul.f32 %v2496_v48, %v1783_v49 }
0x169c   : > { %1787 = vrot.lane.b32.xlu0 %v1785_v50, %s2677_s17 }
0x170e   : > { %v1788_v0 = vpop.permute.xlu0 %1787 }
0x170f   : > { %v1790_v51 = vadd.f32 %v1788_v0, %v3008_v33 }
0x1711   : > { %2497 = vtanh.f32 %v1790_v51 }
0x171b   : > { %v2498_v52 = vpop.eup %2497 }
0x171c   : > { %1794 = vrot.lane.b32.xlu1 %v2498_v52, %s2673_s23 }
0x178e   : > { %v1795_v55 = vpop.permute.xlu1 %1794 }
0x178f   : > { %v1797_v57 = vmul.f32 %v1795_v55, %v1792_v54 }
0x1791   : > { %v1801_v58 = vadd.f32 %v1800_v56, %v1797_v57 }
0x1793   : > { %v1803_v59 = vrot.slane %v1801_v58, 6  ;;  %v1904_v22 = vrot.slane %v1801_v58, 7 }
0x1795   : > { %1804 = vrot.lane.b32.xlu0 %v1803_v59, %s2673_s23 }
0x1807   : > { %v1805_v60 = vpop.permute.xlu0 %1804 }
0x1808   : > { %2293 = vmatmul.mubr.msk.f32.vlgmr.msra.gmra.mrb[10].mxu1 %vm987_vm1, %v1805_v60 }
0x18db   : > { %v1874_v61 = vpop.f32.mrb[10].mxu1 }
0x18dc   : > { %v1875_v62 = vadd.f32 %v1874_v61, %v2993_v25  ;;  %v2294_v12 = vpop.f32.mrb[11].mxu1  ;;  %v1908_v25 = vld [vmem:[%s3172_s6] sm:$0xff] }
0x18dd   : > { %v2361_v18 = vpack.c.bf16 %v1909_v16, %v1908_v25 }
0x18de   : > { %v1879_v63 = vrot.slane %v1875_v62, 1 }
0x18df   : > { %2362 = vmatpush3.bf16.msra.mxu0 %v2361_v18 }
0x18e0   : > { %1888 = vrot.lane.b32.xlu1 %v1879_v63, %s2677_s17  ;;  %v1881_v1 = vadd.f32 %v1879_v63, %v3008_v33  ;;  %2363 = vmatprep.subr.bf16.mxu0 %v2675_v7  ;;  %v2505_v7 = vld [vmem:[%s3173_s7] sm:$0xff] }
0x18e1   : > { %v1916_v30 = vrot.slane %v2505_v7, 3 }
0x18e2   : > { %v2120_v2 = vmul.f32 -1.442695, %v1881_v1 }
0x18e4   : > { %2499 = vpow2.f32 %v2120_v2 }
0x18ee   : > { %v2500_v6 = vpop.eup %2499 }
0x18ef   : > { %v1885_v5 = vadd.f32 1.0, %v2500_v6 }
0x18f1   : > { %2501 = vrcp.f32 %v1885_v5 }
0x18fb   : > { %v2502_v9 = vpop.eup %2501 }
0x18fc   : > { %v1898_v23 = vsub.f32 1.0, %v2502_v9  ;;  %v1906_v26 = vmul.f32 %v2502_v9, %v1904_v22 }
0x1952   : > { %v1889_v11 = vpop.permute.xlu1 %1888 }
0x1953   : > { %v1891_v13 = vmul.f32 %v2502_v9, %v1889_v11 }
0x1955   : > { %1893 = vrot.lane.b32.xlu0 %v1891_v13, %s2677_s17 }
0x19c7   : > { %v1894_v14 = vpop.permute.xlu0 %1893 }
0x19c8   : > { %v1896_v15 = vadd.f32 %v1894_v14, %v3008_v33  ;;  %v2364_v33 = vpack.c.bf16 %v1911_v20, %v1910_v17 }
0x19ca   : > { %2503 = vtanh.f32 %v1896_v15  ;;  %2365 = vmatpush3.bf16.msra.mxu0 %v2364_v33 }
0x19d4   : > { %v2504_v21 = vpop.eup %2503 }
0x19d5   : > { %1900 = vrot.lane.b32.xlu1 %v2504_v21, %s2673_s23 }
0x1a47   : > { %v1901_v24 = vpop.permute.xlu1 %1900 }
0x1a48   : > { %v1903_v27 = vmul.f32 %v1901_v24, %v1898_v23 }
0x1a4a   : > { %v1907_v28 = vadd.f32 %v1906_v26, %v1903_v27 }
0x1a4c   : > { %v1913_v3 = vrot.slane %v1907_v28, 7 }
0x1a4e   : > { %1914 = vrot.lane.b32.xlu0 %v1913_v3, %s2673_s23  ;;  %s3124_s23 = scalar_lea.hbm %s3174_s8, %s2122_s25 }
0x1ac0   : > { %v1915_v29 = vpop.permute.xlu0 %1914 }
0x1ac1   : > { %2304 = vmatmul.mubr.msk.f32.vlgmr.msra.gmra.mrb[12].mxu0 %vm987_vm1, %v1915_v29 }
0x1b94   : > { %v1986_v31 = vpop.f32.mrb[12].mxu0 }
0x1b95   : > { %v1987_v19 = vadd.f32 %v1986_v31, %v1916_v30  ;;  %v2305_v32 = vpop.f32.mrb[13].mxu0 }
0x1b97   : > { %1991 = vst.msk [vmem:[%s337_s19] sm:$0x1] %vm1990_vm0, %v1987_v19 }
0x1b98   : > { %2603 = shalt.err (!%p2600_p9)
}
0x1b99   : > { %s2604_s10 = scalar_lea.hbm %s3124_s23, 16  ;;  %s2608_s16 = scalar_lea.hbm %s3174_s8, 64 }
0x1b9a   : > { %p2605_p2 = scmp.ne.s32.totalorder %s3124_s23, %s2604_s10  ;;  %p2609_p5 = scmp.lt.u32.totalorder %s3124_s23, %s3174_s8 }
0x1b9b   : > { %p2610_p10 = scmp.lt.u32.totalorder %s2608_s16, %s2604_s10  ;;  %p2612_p12 = scmp.lt.u32.totalorder %s2604_s10, %s3124_s23 }
0x1b9c   : > { %p2606_p0 = pnand %p2605_p2, %p3196_p7 }
0x1b9d   : > { %p2611_p4 = por %p2610_p10, %p2609_p5 }
0x1b9e   : > { %p2607_p3 = pneg %p2606_p0 }
0x1b9f   : > { %p2613_p8 = por %p2612_p12, %p2611_p4 }
0x1ba1   : > { %p2614_p11 = pnand %p2613_p8, %p2607_p3 }
0x1ba3   : > { %2617 = shalt.err (!%p2614_p11)
}
0x1ba4   : > { %2378 = dma.vmem_to_hbm [thread:$0]  (%p3196_p7), %s3126_s22, 16, %s3124_s23, %s1993_s20  }
0x1ba5 PF: > { %s3197_s21 = sld [smem:[#allocation15_spill]]  ;;  %p2400_p13 = scmp.ge.s32.totalorder %s2660_s30, 2 }
0x1ba6   : > { %s2017_s25 = sand.u32 1, %s2648_s27  }
0x1ba7   : > { %s2018_s19 = scalar_lea.sflag [#allocation4], %s2017_s25 }
0x1bab   : > { %p3198_p1 = scmp.ne.s32.totalorder %s3197_s21, 0 }
0x1bad   : > { %p2391_p6 = pnand %p2400_p13, %p3198_p1 }
0x1baf   : > { %2643 = dma.done.wait (!%p2391_p6), %s2018_s19, 16  }
0x1bb0   : > { %2645 = vsyncadd (!%p2391_p6), %s2018_s19, 4294967280  ;;  %s3199_s30 = sld [smem:[#allocation13_spill]]  ;;  %s3200_s29 = sld [smem:[#allocation12_spill]] }
0x1bb1   : > { %s3201_s17 = sld [smem:[#allocation14_spill]]  ;;  %s3202_s27 = smov %s2652_s28 }
0x1bb6   : > { %p20_p9 = scmp.ge.s32.totalorder %s3199_s30, 6   ;;  %s3203_s28 = smov %s3200_s29 }
0x1bb7   : > { %s3204_s29 = smov %s3201_s17 }
0x1bb8   :  { %22 = sbr.rel (!%p20_p9) target bundleno = 5 (0x5), region = 100 }
0x1bbf   :  { %2022 = vsyncpa [#allocation3], 1 }
0x1bc0   :  { %2024 = vsyncpa [#allocation3 + $0x1], 1 }
0x1bc1   :  { %2025 = vsyncpa [#allocation6], 1 }
0x1bc2   :  { %2026 = vsyncpa [#allocation4], 1 }
0x1bc3   :  { %2028 = vsyncpa [#allocation4 + $0x1], 1 }

</bundles_post_ra>
